<compile_context>
chip_gen: v7x
topology: tpu7x:2x2x1
jax: 0.10.0
libtpu: 0.0.40
codegen_flags: <defaults>
</compile_context>

<pallas_src>
import functools
import math

import jax
import jax.numpy as jnp
from jax.experimental import pallas as pl
from jax.experimental.pallas import tpu as pltpu


# --------------------------------------------------------------------------
# Fused decoder-layer kernel. One grid step == one batch element.
# --------------------------------------------------------------------------
def _decoder_layer_kernel(*refs, n_head, d_k, d_v, has_base):
    it = iter(refs)
    dec_ref = next(it)                       # (L, D)   query input / residual
    enc_ref = next(it)                       # (Lk, D)  encoder output
    base_ref = next(it) if has_base else None
    pad_ref = next(it)                       # (L, 1)   1 = keep, 0 = padded
    slf_key_ref = next(it)                   # (1, L)   1 = attendable key (self)
    enc_key_ref = next(it)                   # (1, Lk)  1 = attendable key (enc-dec)
    rel_ref = next(it)                       # (H, L, L) relative-position bias
    s_wq, s_wk, s_wv, s_wo, s_g, s_b = (next(it) for _ in range(6))
    c_wq, c_wk, c_wv, c_wo, c_g, c_b = (next(it) for _ in range(6))
    f_w1, f_b1, f_w2, f_b2, f_g, f_b = (next(it) for _ in range(6))
    out_ref = next(it)                       # (L, D)
    slf_attn_ref = next(it)                  # (H, L, L)
    enc_attn_ref = next(it)                  # (H, L, Lk)

    H = n_head
    scale = 1.0 / math.sqrt(d_k)
    pad_valid = pad_ref[...]                 # (L, 1) f32

    def layer_norm(y, gamma, beta):          # LayerNorm(eps=1e-6), f32 math
        mean = jnp.mean(y, axis=-1, keepdims=True)
        var = jnp.mean(jnp.square(y - mean), axis=-1, keepdims=True)
        return (y - mean) * jax.lax.rsqrt(var + 1e-6) * gamma + beta

    def mha(x, kv, key_valid, wq, wk, wv, wo, gamma, beta, rel, causal):
        # x: (Lq, D) f32, kv: (Lk, D) f32, key_valid: (1, Lk) f32
        Lq, D = x.shape
        Lk = kv.shape[0]
        xb = jnp.broadcast_to(x.astype(jnp.bfloat16)[None], (H, Lq, D))
        kvb = jnp.broadcast_to(kv.astype(jnp.bfloat16)[None], (H, Lk, D))

        # Head-batched projections (weights pre-split per head on host, bf16).
        q = jnp.einsum('hld,hdk->hlk', xb, wq[...],
                       preferred_element_type=jnp.float32)          # (H, Lq, dk)
        k = jnp.einsum('hld,hdk->hlk', kvb, wk[...],
                       preferred_element_type=jnp.float32)          # (H, Lk, dk)
        v = jnp.einsum('hld,hdk->hlk', kvb, wv[...],
                       preferred_element_type=jnp.float32)          # (H, Lk, dv)

        q16 = (q * scale).astype(jnp.bfloat16)
        k16 = k.astype(jnp.bfloat16)
        v16 = v.astype(jnp.bfloat16)

        s = jnp.einsum('hqd,hkd->hqk', q16, k16,
                       preferred_element_type=jnp.float32)          # (H, Lq, Lk)
        if rel is not None:
            s = s + rel[...]                                        # relative bias

        # Attention mask rebuilt in-kernel: key validity (x) optional causal.
        mask = jnp.broadcast_to(key_valid != 0.0, (Lq, Lk))
        if causal:
            row = jax.lax.broadcasted_iota(jnp.int32, (Lq, Lk), 0)
            col = jax.lax.broadcasted_iota(jnp.int32, (Lq, Lk), 1)
            mask = mask & (row >= col)
        s = jnp.where(mask[None, :, :], s, -1e9)                    # masked_fill(==0, -1e9)

        m = jnp.max(s, axis=-1, keepdims=True)                      # softmax (f32)
        p = jnp.exp(s - m)
        denom = jnp.sum(p, axis=-1, keepdims=True)
        p = p * pl.reciprocal(denom, approx=True)

        ctx = jnp.einsum('hqk,hkd->hqd', p.astype(jnp.bfloat16), v16,
                         preferred_element_type=jnp.float32)        # (H, Lq, dv)
        o = jnp.einsum('hqd,hdm->hqm', ctx.astype(jnp.bfloat16), wo[...],
                       preferred_element_type=jnp.float32)          # (H, Lq, D)
        o = jnp.sum(o, axis=0)                                      # merge heads
        o = o + x                                                   # residual (dropout=id)
        o = layer_norm(o, gamma[...], beta[...])
        return o, p

    x0 = dec_ref[...].astype(jnp.float32)
    enc = enc_ref[...].astype(jnp.float32)

    # --- self attention (relative bias, causal) ---
    dec1, slf_p = mha(x0, x0, slf_key_ref[...],
                      s_wq, s_wk, s_wv, s_wo, s_g, s_b, rel_ref, causal=True)
    slf_attn_ref[...] = slf_p
    dec1 = dec1 * pad_valid                                         # masked_fill(pad, 0)

    # --- encoder-decoder attention (no relative bias, no causal) ---
    dec2, enc_p = mha(dec1, enc, enc_key_ref[...],
                      c_wq, c_wk, c_wv, c_wo, c_g, c_b, None, causal=False)
    enc_attn_ref[...] = enc_p
    dec2 = dec2 * pad_valid                                         # masked_fill(pad, 0)

    if has_base:
        dec2 = (dec2 + base_ref[...].astype(jnp.float32)) * pad_valid

    # --- position-wise FFN ---
    h = jnp.dot(dec2.astype(jnp.bfloat16), f_w1[...],
                preferred_element_type=jnp.float32) + f_b1[...]
    h = jnp.maximum(h, 0.0)                                         # ReLU
    y = jnp.dot(h.astype(jnp.bfloat16), f_w2[...],
                preferred_element_type=jnp.float32) + f_b2[...]
    y = y + dec2                                                    # residual (dropout=id)
    y = layer_norm(y, f_g[...], f_b[...])
    y = y * pad_valid                                               # masked_fill(pad, 0)
    out_ref[...] = y.astype(out_ref.dtype)


def run_decoder_layer(dec_input, enc_output, base_output, pad_valid, slf_key,
                      enc_key, rel_bias, slf_w, enc_w, ffn_w, n_head, d_k, d_v):
    B, L, D = dec_input.shape
    Lk = enc_output.shape[1]
    d_inner = ffn_w["w1"].shape[1]
    has_base = base_output is not None

    full = lambda shape: pl.BlockSpec(shape, lambda b: (0,) * len(shape))
    perb = lambda s1, s2: pl.BlockSpec((None, s1, s2), lambda b: (b, 0, 0))

    operands = [dec_input, enc_output]
    in_specs = [perb(L, D), perb(Lk, D)]
    if has_base:
        operands.append(base_output)
        in_specs.append(perb(L, D))
    operands += [pad_valid, slf_key, enc_key, rel_bias]
    in_specs += [perb(L, 1), perb(1, L), perb(1, Lk), full((n_head, L, L))]
    for w in (slf_w, enc_w):
        operands += [w["wq"], w["wk"], w["wv"], w["wo"], w["gamma"], w["beta"]]
        in_specs += [full((n_head, D, d_k)), full((n_head, D, d_k)),
                     full((n_head, D, d_v)), full((n_head, d_v, D)),
                     full((1, D)), full((1, D))]
    operands += [ffn_w["w1"], ffn_w["b1"], ffn_w["w2"], ffn_w["b2"],
                 ffn_w["gamma"], ffn_w["beta"]]
    in_specs += [full((D, d_inner)), full((1, d_inner)),
                 full((d_inner, D)), full((1, D)), full((1, D)), full((1, D))]

    out_shape = (jax.ShapeDtypeStruct((B, L, D), dec_input.dtype),
                 jax.ShapeDtypeStruct((B, n_head, L, L), jnp.float32),
                 jax.ShapeDtypeStruct((B, n_head, L, Lk), jnp.float32))
    out_specs = (
        pl.BlockSpec((None, L, D), lambda b: (b, 0, 0)),
        pl.BlockSpec((None, n_head, L, L), lambda b: (b, 0, 0, 0)),
        pl.BlockSpec((None, n_head, L, Lk), lambda b: (b, 0, 0, 0)),
    )

    kernel = functools.partial(_decoder_layer_kernel, n_head=n_head, d_k=d_k,
                               d_v=d_v, has_base=has_base)
    grid_spec = pltpu.PrefetchScalarGridSpec(
        num_scalar_prefetch=0, grid=(B,), in_specs=in_specs, out_specs=out_specs)
    return pl.pallas_call(
        kernel, out_shape=out_shape, grid_spec=grid_spec,
        compiler_params=pltpu.CompilerParams(
            dimension_semantics=("parallel",),
            vmem_limit_bytes=32 * 1024 * 1024),
    )(*operands)


# --------------------------------------------------------------------------
# DecoderLayer forward (host-side prep; all compute in the fused kernel).
# --------------------------------------------------------------------------
def decoder_layer_forward(params, dec_input, enc_output, base_output=None,
                          pad_mask=None, slf_attn_mask=None, dec_enc_attn_mask=None):
    B, L, D = dec_input.shape
    H, dk, dv = params["n_head"], params["d_k"], params["d_v"]

    pad_valid = 1.0 - pad_mask.astype(jnp.float32)                       # (B, L, 1)
    # TODO(synk): the kernel rebuilds attention masks as (causal AND key-valid);
    #             arbitrary dense (B,L,L) masks are reduced to their per-key projection.
    slf_key = jnp.any(slf_attn_mask != 0, axis=1)[:, None, :].astype(jnp.float32)
    enc_key = jnp.any(dec_enc_attn_mask != 0, axis=1)[:, None, :].astype(jnp.float32)

    # Expand relative-position table (H, 2L-1) -> per-head bias (H, L, L) (self-attn only).
    rel_idx = jnp.arange(L)[:, None] - jnp.arange(L)[None, :] + (L - 1)
    rel_bias = params["slf"]["rel_table"][:, rel_idx].astype(jnp.float32)

    def prep(m):  # split projection weights per head, cast MXU operands to bf16
        return {
            "wq": m["wq"].reshape(D, H, dk).transpose(1, 0, 2).astype(jnp.bfloat16),
            "wk": m["wk"].reshape(D, H, dk).transpose(1, 0, 2).astype(jnp.bfloat16),
            "wv": m["wv"].reshape(D, H, dv).transpose(1, 0, 2).astype(jnp.bfloat16),
            "wo": m["wo"].reshape(H, dv, D).astype(jnp.bfloat16),
            "gamma": m["gamma"], "beta": m["beta"],
        }

    slf_w = prep(params["slf"])
    enc_w = prep(params["enc"])
    ffn_w = {"w1": params["ffn"]["w1"].astype(jnp.bfloat16),
             "b1": params["ffn"]["b1"],
             "w2": params["ffn"]["w2"].astype(jnp.bfloat16),
             "b2": params["ffn"]["b2"],
             "gamma": params["ffn"]["gamma"], "beta": params["ffn"]["beta"]}

    return run_decoder_layer(dec_input, enc_output, base_output, pad_valid,
                             slf_key, enc_key, rel_bias, slf_w, enc_w, ffn_w,
                             H, dk, dv)


# --------------------------------------------------------------------------
# Deterministic parameter init + example run.
# --------------------------------------------------------------------------
def init_params(key, len_q, d_model, d_inner, n_head, d_k, d_v):
    ks = jax.random.split(key, 12)
    nrm = lambda k, shape: (jax.random.normal(k, shape) * 0.1).astype(jnp.float32)
    ones = lambda n: jnp.ones((1, n), jnp.float32)
    zeros = lambda n: jnp.zeros((1, n), jnp.float32)
    return {
        "n_head": n_head, "d_k": d_k, "d_v": d_v,
        "slf": {
            "wq": nrm(ks[0], (d_model, n_head * d_k)),
            "wk": nrm(ks[1], (d_model, n_head * d_k)),
            "wv": nrm(ks[2], (d_model, n_head * d_v)),
            "wo": nrm(ks[3], (n_head * d_v, d_model)),
            "gamma": ones(d_model), "beta": zeros(d_model),
            "rel_table": nrm(ks[4], (n_head, 2 * len_q - 1)),
        },
        "enc": {
            "wq": nrm(ks[5], (d_model, n_head * d_k)),
            "wk": nrm(ks[6], (d_model, n_head * d_k)),
            "wv": nrm(ks[7], (d_model, n_head * d_v)),
            "wo": nrm(ks[8], (n_head * d_v, d_model)),
            "gamma": ones(d_model), "beta": zeros(d_model),
        },
        "ffn": {
            "w1": nrm(ks[9], (d_model, d_inner)),
            "b1": zeros(d_inner),
            "w2": nrm(ks[10], (d_inner, d_model)),
            "b2": zeros(d_model),
            "gamma": ones(d_model), "beta": zeros(d_model),
        },
    }


if __name__ == "__main__":
    B, L, d_model, d_inner, n_head, d_k, d_v = 2, 8, 32, 64, 4, 8, 8

    key = jax.random.PRNGKey(0)
    k_par, k_dec, k_enc = jax.random.split(key, 3)
    params = init_params(k_par, L, d_model, d_inner, n_head, d_k, d_v)

    dec_input = jax.random.normal(k_dec, (B, L, d_model), jnp.float32)
    enc_output = jax.random.normal(k_enc, (B, L, d_model), jnp.float32)

    # pad mask: True where position is padding (last 2 positions of batch 1)
    lens = jnp.array([L, L - 2])
    pad_mask = (jnp.arange(L)[None, :] >= lens[:, None])[..., None]          # (B, L, 1) bool
    nonpad = ~pad_mask[..., 0]                                               # (B, L)

    subseq = jnp.tril(jnp.ones((L, L), bool))
    slf_attn_mask = subseq[None, :, :] & nonpad[:, None, :]                  # (B, L, L)
    dec_enc_attn_mask = jnp.broadcast_to(nonpad[:, None, :], (B, L, L))      # (B, L, L)

    dec_out, slf_attn, enc_attn = decoder_layer_forward(
        params, dec_input, enc_output, base_output=None,
        pad_mask=pad_mask, slf_attn_mask=slf_attn_mask,
        dec_enc_attn_mask=dec_enc_attn_mask)

    jax.block_until_ready((dec_out, slf_attn, enc_attn))
    assert dec_out.shape == (B, L, d_model)
    assert slf_attn.shape == (B, n_head, L, L)
    assert enc_attn.shape == (B, n_head, L, L)
    print("KERNEL_OK")
</pallas_src>

<mosaic_0001>
module attributes {stable_mosaic.version = 11 : i64} {
  func.func @_decoder_layer_kernel(%arg0: i32, %arg1: memref<1x8x32xf32, #tpu.memory_space<vmem>>, %arg2: memref<1x8x32xf32, #tpu.memory_space<vmem>>, %arg3: memref<1x8x1xf32, #tpu.memory_space<vmem>>, %arg4: memref<1x1x8xf32, #tpu.memory_space<vmem>>, %arg5: memref<1x1x8xf32, #tpu.memory_space<vmem>>, %arg6: memref<4x8x8xf32, #tpu.memory_space<vmem>>, %arg7: memref<4x32x8xbf16, #tpu.memory_space<vmem>>, %arg8: memref<4x32x8xbf16, #tpu.memory_space<vmem>>, %arg9: memref<4x32x8xbf16, #tpu.memory_space<vmem>>, %arg10: memref<4x8x32xbf16, #tpu.memory_space<vmem>>, %arg11: memref<1x32xf32, #tpu.memory_space<vmem>>, %arg12: memref<1x32xf32, #tpu.memory_space<vmem>>, %arg13: memref<4x32x8xbf16, #tpu.memory_space<vmem>>, %arg14: memref<4x32x8xbf16, #tpu.memory_space<vmem>>, %arg15: memref<4x32x8xbf16, #tpu.memory_space<vmem>>, %arg16: memref<4x8x32xbf16, #tpu.memory_space<vmem>>, %arg17: memref<1x32xf32, #tpu.memory_space<vmem>>, %arg18: memref<1x32xf32, #tpu.memory_space<vmem>>, %arg19: memref<32x64xbf16, #tpu.memory_space<vmem>>, %arg20: memref<1x64xf32, #tpu.memory_space<vmem>>, %arg21: memref<64x32xbf16, #tpu.memory_space<vmem>>, %arg22: memref<1x32xf32, #tpu.memory_space<vmem>>, %arg23: memref<1x32xf32, #tpu.memory_space<vmem>>, %arg24: memref<1x32xf32, #tpu.memory_space<vmem>>, %arg25: memref<1x8x32xf32, #tpu.memory_space<vmem>>, %arg26: memref<1x4x8x8xf32, #tpu.memory_space<vmem>>, %arg27: memref<1x4x8x8xf32, #tpu.memory_space<vmem>>) attributes {dimension_semantics = [#tpu.dimension_semantics<parallel>], iteration_bounds = array<i64: 2>, scalar_prefetch = 0 : i64, scratch_operands = 0 : i64, tpu.core_type = #tpu.core_type<tc>, window_params = [{transform_indices = @transform_0, window_bounds = array<i64: 1, 8, 32>}, {transform_indices = @transform_1, window_bounds = array<i64: 1, 8, 32>}, {transform_indices = @transform_2, window_bounds = array<i64: 1, 8, 1>}, {transform_indices = @transform_3, window_bounds = array<i64: 1, 1, 8>}, {transform_indices = @transform_4, window_bounds = array<i64: 1, 1, 8>}, {pipeline_mode = #tpu.pipeline_mode<synchronous>, transform_indices = @transform_5, window_bounds = array<i64: 4, 8, 8>}, {pipeline_mode = #tpu.pipeline_mode<synchronous>, transform_indices = @transform_6, window_bounds = array<i64: 4, 32, 8>}, {pipeline_mode = #tpu.pipeline_mode<synchronous>, transform_indices = @transform_7, window_bounds = array<i64: 4, 32, 8>}, {pipeline_mode = #tpu.pipeline_mode<synchronous>, transform_indices = @transform_8, window_bounds = array<i64: 4, 32, 8>}, {pipeline_mode = #tpu.pipeline_mode<synchronous>, transform_indices = @transform_9, window_bounds = array<i64: 4, 8, 32>}, {pipeline_mode = #tpu.pipeline_mode<synchronous>, transform_indices = @transform_10, window_bounds = array<i64: 1, 32>}, {pipeline_mode = #tpu.pipeline_mode<synchronous>, transform_indices = @transform_11, window_bounds = array<i64: 1, 32>}, {pipeline_mode = #tpu.pipeline_mode<synchronous>, transform_indices = @transform_12, window_bounds = array<i64: 4, 32, 8>}, {pipeline_mode = #tpu.pipeline_mode<synchronous>, transform_indices = @transform_13, window_bounds = array<i64: 4, 32, 8>}, {pipeline_mode = #tpu.pipeline_mode<synchronous>, transform_indices = @transform_14, window_bounds = array<i64: 4, 32, 8>}, {pipeline_mode = #tpu.pipeline_mode<synchronous>, transform_indices = @transform_15, window_bounds = array<i64: 4, 8, 32>}, {pipeline_mode = #tpu.pipeline_mode<synchronous>, transform_indices = @transform_16, window_bounds = array<i64: 1, 32>}, {pipeline_mode = #tpu.pipeline_mode<synchronous>, transform_indices = @transform_17, window_bounds = array<i64: 1, 32>}, {pipeline_mode = #tpu.pipeline_mode<synchronous>, transform_indices = @transform_18, window_bounds = array<i64: 32, 64>}, {pipeline_mode = #tpu.pipeline_mode<synchronous>, transform_indices = @transform_19, window_bounds = array<i64: 1, 64>}, {pipeline_mode = #tpu.pipeline_mode<synchronous>, transform_indices = @transform_20, window_bounds = array<i64: 64, 32>}, {pipeline_mode = #tpu.pipeline_mode<synchronous>, transform_indices = @transform_21, window_bounds = array<i64: 1, 32>}, {pipeline_mode = #tpu.pipeline_mode<synchronous>, transform_indices = @transform_22, window_bounds = array<i64: 1, 32>}, {pipeline_mode = #tpu.pipeline_mode<synchronous>, transform_indices = @transform_23, window_bounds = array<i64: 1, 32>}, {transform_indices = @transform_24, window_bounds = array<i64: 1, 8, 32>}, {transform_indices = @transform_25, window_bounds = array<i64: 1, 4, 8, 8>}, {transform_indices = @transform_26, window_bounds = array<i64: 1, 4, 8, 8>}]} {
    %c0 = arith.constant 0 : index
    %c0_0 = arith.constant 0 : index
    %c0_1 = arith.constant 0 : index
    %0 = vector.load %arg3[%c0, %c0_0, %c0_1] : memref<1x8x1xf32, #tpu.memory_space<vmem>>, vector<1x8x1xf32>
    %1 = vector.shape_cast %0 : vector<1x8x1xf32> to vector<8x1xf32>
    %c0_2 = arith.constant 0 : index
    %c0_3 = arith.constant 0 : index
    %c0_4 = arith.constant 0 : index
    %2 = vector.load %arg1[%c0_2, %c0_3, %c0_4] : memref<1x8x32xf32, #tpu.memory_space<vmem>>, vector<1x8x32xf32>
    %3 = vector.shape_cast %2 : vector<1x8x32xf32> to vector<8x32xf32>
    %c0_5 = arith.constant 0 : index
    %c0_6 = arith.constant 0 : index
    %c0_7 = arith.constant 0 : index
    %4 = vector.load %arg2[%c0_5, %c0_6, %c0_7] : memref<1x8x32xf32, #tpu.memory_space<vmem>>, vector<1x8x32xf32>
    %5 = vector.shape_cast %4 : vector<1x8x32xf32> to vector<8x32xf32>
    %c0_8 = arith.constant 0 : index
    %c0_9 = arith.constant 0 : index
    %c0_10 = arith.constant 0 : index
    %6 = vector.load %arg4[%c0_8, %c0_9, %c0_10] : memref<1x1x8xf32, #tpu.memory_space<vmem>>, vector<1x1x8xf32>
    %7 = vector.shape_cast %6 : vector<1x1x8xf32> to vector<1x8xf32>
    %8 = arith.truncf %3 : vector<8x32xf32> to vector<8x32xbf16>
    %9 = vector.shape_cast %8 : vector<8x32xbf16> to vector<1x8x32xbf16>
    %10 = vector.shape_cast %9 : vector<1x8x32xbf16> to vector<1x8x32xbf16>
    %11 = vector.broadcast %10 : vector<1x8x32xbf16> to vector<4x8x32xbf16>
    %12 = arith.truncf %3 : vector<8x32xf32> to vector<8x32xbf16>
    %13 = vector.shape_cast %12 : vector<8x32xbf16> to vector<1x8x32xbf16>
    %14 = vector.shape_cast %13 : vector<1x8x32xbf16> to vector<1x8x32xbf16>
    %15 = vector.broadcast %14 : vector<1x8x32xbf16> to vector<4x8x32xbf16>
    %c0_11 = arith.constant 0 : index
    %c0_12 = arith.constant 0 : index
    %c0_13 = arith.constant 0 : index
    %16 = vector.load %arg7[%c0_11, %c0_12, %c0_13] : memref<4x32x8xbf16, #tpu.memory_space<vmem>>, vector<4x32x8xbf16>
    "tpu.trace_start"() <{level = 10 : i32, message = "hld,hdk->hlk"}> : () -> ()
    %cst = arith.constant dense<0.000000e+00> : vector<4x8x8xf32>
    %17 = tpu.matmul %11, %16, %cst {dimension_numbers = #tpu.dot_dimension_numbers<[2], [1], [1], [2], [0, 0, 0, 1, 1, 2], [0], [0]>} : vector<4x8x32xbf16>, vector<4x32x8xbf16>, vector<4x8x8xf32> -> vector<4x8x8xf32>
    "tpu.trace_stop"() : () -> ()
    %c0_14 = arith.constant 0 : index
    %c0_15 = arith.constant 0 : index
    %c0_16 = arith.constant 0 : index
    %18 = vector.load %arg8[%c0_14, %c0_15, %c0_16] : memref<4x32x8xbf16, #tpu.memory_space<vmem>>, vector<4x32x8xbf16>
    "tpu.trace_start"() <{level = 10 : i32, message = "hld,hdk->hlk"}> : () -> ()
    %cst_17 = arith.constant dense<0.000000e+00> : vector<4x8x8xf32>
    %19 = tpu.matmul %15, %18, %cst_17 {dimension_numbers = #tpu.dot_dimension_numbers<[2], [1], [1], [2], [0, 0, 0, 1, 1, 2], [0], [0]>} : vector<4x8x32xbf16>, vector<4x32x8xbf16>, vector<4x8x8xf32> -> vector<4x8x8xf32>
    "tpu.trace_stop"() : () -> ()
    %c0_18 = arith.constant 0 : index
    %c0_19 = arith.constant 0 : index
    %c0_20 = arith.constant 0 : index
    %20 = vector.load %arg9[%c0_18, %c0_19, %c0_20] : memref<4x32x8xbf16, #tpu.memory_space<vmem>>, vector<4x32x8xbf16>
    "tpu.trace_start"() <{level = 10 : i32, message = "hld,hdk->hlk"}> : () -> ()
    %cst_21 = arith.constant dense<0.000000e+00> : vector<4x8x8xf32>
    %21 = tpu.matmul %15, %20, %cst_21 {dimension_numbers = #tpu.dot_dimension_numbers<[2], [1], [1], [2], [0, 0, 0, 1, 1, 2], [0], [0]>} : vector<4x8x32xbf16>, vector<4x32x8xbf16>, vector<4x8x8xf32> -> vector<4x8x8xf32>
    "tpu.trace_stop"() : () -> ()
    %cst_22 = arith.constant 0.353553385 : f32
    %22 = vector.broadcast %cst_22 : f32 to vector<4x8x8xf32>
    %23 = arith.mulf %17, %22 : vector<4x8x8xf32>
    %24 = arith.truncf %23 : vector<4x8x8xf32> to vector<4x8x8xbf16>
    %25 = arith.truncf %19 : vector<4x8x8xf32> to vector<4x8x8xbf16>
    %26 = arith.truncf %21 : vector<4x8x8xf32> to vector<4x8x8xbf16>
    "tpu.trace_start"() <{level = 10 : i32, message = "hqd,hkd->hqk"}> : () -> ()
    %cst_23 = arith.constant dense<0.000000e+00> : vector<4x8x8xf32>
    %27 = tpu.matmul %24, %25, %cst_23 {dimension_numbers = #tpu.dot_dimension_numbers<[2], [2], [1], [1], [0, 0, 0, 1, 1, 1], [0], [0]>} : vector<4x8x8xbf16>, vector<4x8x8xbf16>, vector<4x8x8xf32> -> vector<4x8x8xf32>
    "tpu.trace_stop"() : () -> ()
    %c0_24 = arith.constant 0 : index
    %c0_25 = arith.constant 0 : index
    %c0_26 = arith.constant 0 : index
    %28 = vector.load %arg6[%c0_24, %c0_25, %c0_26] : memref<4x8x8xf32, #tpu.memory_space<vmem>>, vector<4x8x8xf32>
    %29 = arith.addf %27, %28 : vector<4x8x8xf32>
    %cst_27 = arith.constant 0.000000e+00 : f32
    %30 = vector.broadcast %cst_27 : f32 to vector<1x8xf32>
    %31 = arith.cmpf one, %7, %30 : vector<1x8xf32>
    %32 = vector.shape_cast %31 : vector<1x8xi1> to vector<1x8xi1>
    %33 = vector.broadcast %32 : vector<1x8xi1> to vector<8x8xi1>
    %34 = tpu.iota {dimensions = array<i32: 0>} : vector<8x8xi32>
    %35 = tpu.iota {dimensions = array<i32: 1>} : vector<8x8xi32>
    %36 = arith.cmpi sge, %34, %35 : vector<8x8xi32>
    %37 = arith.andi %33, %36 : vector<8x8xi1>
    %38 = vector.shape_cast %37 : vector<8x8xi1> to vector<1x8x8xi1>
    %cst_28 = arith.constant -1.000000e+09 : f32
    %39 = vector.shape_cast %38 : vector<1x8x8xi1> to vector<1x8x8xi1>
    %40 = vector.broadcast %39 : vector<1x8x8xi1> to vector<4x8x8xi1>
    %41 = vector.broadcast %cst_28 : f32 to vector<4x8x8xf32>
    %42 = arith.select %40, %29, %41 : vector<4x8x8xi1>, vector<4x8x8xf32>
    %cst_29 = arith.constant dense<0xFF800000> : vector<4x8xf32>
    %43 = vector.multi_reduction <maximumf>, %42, %cst_29 [2] : vector<4x8x8xf32> to vector<4x8xf32>
    %44 = vector.shape_cast %43 : vector<4x8xf32> to vector<4x8x1xf32>
    %45 = vector.broadcast %44 : vector<4x8x1xf32> to vector<4x8x8xf32>
    %46 = arith.subf %42, %45 : vector<4x8x8xf32>
    %47 = math.exp %46 : vector<4x8x8xf32>
    %cst_30 = arith.constant dense<0.000000e+00> : vector<4x8xf32>
    %48 = vector.multi_reduction <add>, %47, %cst_30 [2] : vector<4x8x8xf32> to vector<4x8xf32>
    %49 = vector.shape_cast %48 : vector<4x8xf32> to vector<4x8x1xf32>
    %50 = tpu.reciprocal %49 {approx = true} : vector<4x8x1xf32> -> vector<4x8x1xf32>
    %51 = vector.broadcast %50 : vector<4x8x1xf32> to vector<4x8x8xf32>
    %52 = arith.mulf %47, %51 : vector<4x8x8xf32>
    %53 = arith.truncf %52 : vector<4x8x8xf32> to vector<4x8x8xbf16>
    "tpu.trace_start"() <{level = 10 : i32, message = "hqk,hkd->hqd"}> : () -> ()
    %cst_31 = arith.constant dense<0.000000e+00> : vector<4x8x8xf32>
    %54 = tpu.matmul %53, %26, %cst_31 {dimension_numbers = #tpu.dot_dimension_numbers<[2], [1], [1], [2], [0, 0, 0, 1, 1, 2], [0], [0]>} : vector<4x8x8xbf16>, vector<4x8x8xbf16>, vector<4x8x8xf32> -> vector<4x8x8xf32>
    "tpu.trace_stop"() : () -> ()
    %55 = arith.truncf %54 : vector<4x8x8xf32> to vector<4x8x8xbf16>
    %c0_32 = arith.constant 0 : index
    %c0_33 = arith.constant 0 : index
    %c0_34 = arith.constant 0 : index
    %56 = vector.load %arg10[%c0_32, %c0_33, %c0_34] : memref<4x8x32xbf16, #tpu.memory_space<vmem>>, vector<4x8x32xbf16>
    "tpu.trace_start"() <{level = 10 : i32, message = "hqd,hdm->hqm"}> : () -> ()
    %cst_35 = arith.constant dense<0.000000e+00> : vector<4x8x32xf32>
    %57 = tpu.matmul %55, %56, %cst_35 {dimension_numbers = #tpu.dot_dimension_numbers<[2], [1], [1], [2], [0, 0, 0, 1, 1, 2], [0], [0]>} : vector<4x8x8xbf16>, vector<4x8x32xbf16>, vector<4x8x32xf32> -> vector<4x8x32xf32>
    "tpu.trace_stop"() : () -> ()
    %cst_36 = arith.constant dense<0.000000e+00> : vector<8x32xf32>
    %58 = vector.multi_reduction <add>, %57, %cst_36 [0] : vector<4x8x32xf32> to vector<8x32xf32>
    %59 = arith.addf %58, %3 : vector<8x32xf32>
    %c0_37 = arith.constant 0 : index
    %c0_38 = arith.constant 0 : index
    %60 = vector.load %arg11[%c0_37, %c0_38] : memref<1x32xf32, #tpu.memory_space<vmem>>, vector<1x32xf32>
    %c0_39 = arith.constant 0 : index
    %c0_40 = arith.constant 0 : index
    %61 = vector.load %arg12[%c0_39, %c0_40] : memref<1x32xf32, #tpu.memory_space<vmem>>, vector<1x32xf32>
    %cst_41 = arith.constant dense<0.000000e+00> : vector<8xf32>
    %62 = vector.multi_reduction <add>, %59, %cst_41 [1] : vector<8x32xf32> to vector<8xf32>
    %63 = vector.shape_cast %62 : vector<8xf32> to vector<8x1xf32>
    %cst_42 = arith.constant 3.200000e+01 : f32
    %64 = vector.broadcast %cst_42 : f32 to vector<8x1xf32>
    %65 = arith.divf %63, %64 : vector<8x1xf32>
    %66 = vector.broadcast %65 : vector<8x1xf32> to vector<8x32xf32>
    %67 = arith.subf %59, %66 : vector<8x32xf32>
    %68 = arith.mulf %67, %67 : vector<8x32xf32>
    %cst_43 = arith.constant dense<0.000000e+00> : vector<8xf32>
    %69 = vector.multi_reduction <add>, %68, %cst_43 [1] : vector<8x32xf32> to vector<8xf32>
    %70 = vector.shape_cast %69 : vector<8xf32> to vector<8x1xf32>
    %cst_44 = arith.constant 3.200000e+01 : f32
    %71 = vector.broadcast %cst_44 : f32 to vector<8x1xf32>
    %72 = arith.divf %70, %71 : vector<8x1xf32>
    %73 = vector.broadcast %65 : vector<8x1xf32> to vector<8x32xf32>
    %74 = arith.subf %59, %73 : vector<8x32xf32>
    %cst_45 = arith.constant 9.99999997E-7 : f32
    %75 = vector.broadcast %cst_45 : f32 to vector<8x1xf32>
    %76 = arith.addf %72, %75 : vector<8x1xf32>
    %77 = math.rsqrt %76 : vector<8x1xf32>
    %78 = vector.broadcast %77 : vector<8x1xf32> to vector<8x32xf32>
    %79 = arith.mulf %74, %78 : vector<8x32xf32>
    %80 = vector.broadcast %60 : vector<1x32xf32> to vector<8x32xf32>
    %81 = arith.mulf %79, %80 : vector<8x32xf32>
    %82 = vector.broadcast %61 : vector<1x32xf32> to vector<8x32xf32>
    %83 = arith.addf %81, %82 : vector<8x32xf32>
    %c0_46 = arith.constant 0 : index
    %c0_47 = arith.constant 0 : index
    %c0_48 = arith.constant 0 : index
    %c0_49 = arith.constant 0 : index
    %84 = vector.load %arg26[%c0_46, %c0_47, %c0_48, %c0_49] : memref<1x4x8x8xf32, #tpu.memory_space<vmem>>, vector<1x4x8x8xf32>
    %85 = vector.shape_cast %84 : vector<1x4x8x8xf32> to vector<4x8x8xf32>
    %86 = vector.shape_cast %52 : vector<4x8x8xf32> to vector<1x4x8x8xf32>
    tpu.vector_store %arg26[%c0_46, %c0_47, %c0_48, %c0_49], %86 {strides = array<i32>} : memref<1x4x8x8xf32, #tpu.memory_space<vmem>>, vector<1x4x8x8xf32>,
    %87 = vector.broadcast %1 : vector<8x1xf32> to vector<8x32xf32>
    %88 = arith.mulf %83, %87 : vector<8x32xf32>
    %c0_50 = arith.constant 0 : index
    %c0_51 = arith.constant 0 : index
    %c0_52 = arith.constant 0 : index
    %89 = vector.load %arg5[%c0_50, %c0_51, %c0_52] : memref<1x1x8xf32, #tpu.memory_space<vmem>>, vector<1x1x8xf32>
    %90 = vector.shape_cast %89 : vector<1x1x8xf32> to vector<1x8xf32>
    %91 = arith.truncf %88 : vector<8x32xf32> to vector<8x32xbf16>
    %92 = vector.shape_cast %91 : vector<8x32xbf16> to vector<1x8x32xbf16>
    %93 = vector.shape_cast %92 : vector<1x8x32xbf16> to vector<1x8x32xbf16>
    %94 = vector.broadcast %93 : vector<1x8x32xbf16> to vector<4x8x32xbf16>
    %95 = arith.truncf %5 : vector<8x32xf32> to vector<8x32xbf16>
    %96 = vector.shape_cast %95 : vector<8x32xbf16> to vector<1x8x32xbf16>
    %97 = vector.shape_cast %96 : vector<1x8x32xbf16> to vector<1x8x32xbf16>
    %98 = vector.broadcast %97 : vector<1x8x32xbf16> to vector<4x8x32xbf16>
    %c0_53 = arith.constant 0 : index
    %c0_54 = arith.constant 0 : index
    %c0_55 = arith.constant 0 : index
    %99 = vector.load %arg13[%c0_53, %c0_54, %c0_55] : memref<4x32x8xbf16, #tpu.memory_space<vmem>>, vector<4x32x8xbf16>
    "tpu.trace_start"() <{level = 10 : i32, message = "hld,hdk->hlk"}> : () -> ()
    %cst_56 = arith.constant dense<0.000000e+00> : vector<4x8x8xf32>
    %100 = tpu.matmul %94, %99, %cst_56 {dimension_numbers = #tpu.dot_dimension_numbers<[2], [1], [1], [2], [0, 0, 0, 1, 1, 2], [0], [0]>} : vector<4x8x32xbf16>, vector<4x32x8xbf16>, vector<4x8x8xf32> -> vector<4x8x8xf32>
    "tpu.trace_stop"() : () -> ()
    %c0_57 = arith.constant 0 : index
    %c0_58 = arith.constant 0 : index
    %c0_59 = arith.constant 0 : index
    %101 = vector.load %arg14[%c0_57, %c0_58, %c0_59] : memref<4x32x8xbf16, #tpu.memory_space<vmem>>, vector<4x32x8xbf16>
    "tpu.trace_start"() <{level = 10 : i32, message = "hld,hdk->hlk"}> : () -> ()
    %cst_60 = arith.constant dense<0.000000e+00> : vector<4x8x8xf32>
    %102 = tpu.matmul %98, %101, %cst_60 {dimension_numbers = #tpu.dot_dimension_numbers<[2], [1], [1], [2], [0, 0, 0, 1, 1, 2], [0], [0]>} : vector<4x8x32xbf16>, vector<4x32x8xbf16>, vector<4x8x8xf32> -> vector<4x8x8xf32>
    "tpu.trace_stop"() : () -> ()
    %c0_61 = arith.constant 0 : index
    %c0_62 = arith.constant 0 : index
    %c0_63 = arith.constant 0 : index
    %103 = vector.load %arg15[%c0_61, %c0_62, %c0_63] : memref<4x32x8xbf16, #tpu.memory_space<vmem>>, vector<4x32x8xbf16>
    "tpu.trace_start"() <{level = 10 : i32, message = "hld,hdk->hlk"}> : () -> ()
    %cst_64 = arith.constant dense<0.000000e+00> : vector<4x8x8xf32>
    %104 = tpu.matmul %98, %103, %cst_64 {dimension_numbers = #tpu.dot_dimension_numbers<[2], [1], [1], [2], [0, 0, 0, 1, 1, 2], [0], [0]>} : vector<4x8x32xbf16>, vector<4x32x8xbf16>, vector<4x8x8xf32> -> vector<4x8x8xf32>
    "tpu.trace_stop"() : () -> ()
    %cst_65 = arith.constant 0.353553385 : f32
    %105 = vector.broadcast %cst_65 : f32 to vector<4x8x8xf32>
    %106 = arith.mulf %100, %105 : vector<4x8x8xf32>
    %107 = arith.truncf %106 : vector<4x8x8xf32> to vector<4x8x8xbf16>
    %108 = arith.truncf %102 : vector<4x8x8xf32> to vector<4x8x8xbf16>
    %109 = arith.truncf %104 : vector<4x8x8xf32> to vector<4x8x8xbf16>
    "tpu.trace_start"() <{level = 10 : i32, message = "hqd,hkd->hqk"}> : () -> ()
    %cst_66 = arith.constant dense<0.000000e+00> : vector<4x8x8xf32>
    %110 = tpu.matmul %107, %108, %cst_66 {dimension_numbers = #tpu.dot_dimension_numbers<[2], [2], [1], [1], [0, 0, 0, 1, 1, 1], [0], [0]>} : vector<4x8x8xbf16>, vector<4x8x8xbf16>, vector<4x8x8xf32> -> vector<4x8x8xf32>
    %cst_67 = arith.constant 0.000000e+00 : f32
    "tpu.trace_stop"() : () -> ()
    %111 = vector.broadcast %cst_67 : f32 to vector<1x8xf32>
    %112 = arith.cmpf one, %90, %111 : vector<1x8xf32>
    %113 = vector.shape_cast %112 : vector<1x8xi1> to vector<1x8xi1>
    %114 = vector.broadcast %113 : vector<1x8xi1> to vector<8x8xi1>
    %115 = vector.shape_cast %114 : vector<8x8xi1> to vector<1x8x8xi1>
    %cst_68 = arith.constant -1.000000e+09 : f32
    %116 = vector.shape_cast %115 : vector<1x8x8xi1> to vector<1x8x8xi1>
    %117 = vector.broadcast %116 : vector<1x8x8xi1> to vector<4x8x8xi1>
    %118 = vector.broadcast %cst_68 : f32 to vector<4x8x8xf32>
    %119 = arith.select %117, %110, %118 : vector<4x8x8xi1>, vector<4x8x8xf32>
    %cst_69 = arith.constant dense<0xFF800000> : vector<4x8xf32>
    %120 = vector.multi_reduction <maximumf>, %119, %cst_69 [2] : vector<4x8x8xf32> to vector<4x8xf32>
    %121 = vector.shape_cast %120 : vector<4x8xf32> to vector<4x8x1xf32>
    %122 = vector.broadcast %121 : vector<4x8x1xf32> to vector<4x8x8xf32>
    %123 = arith.subf %119, %122 : vector<4x8x8xf32>
    %124 = math.exp %123 : vector<4x8x8xf32>
    %cst_70 = arith.constant dense<0.000000e+00> : vector<4x8xf32>
    %125 = vector.multi_reduction <add>, %124, %cst_70 [2] : vector<4x8x8xf32> to vector<4x8xf32>
    %126 = vector.shape_cast %125 : vector<4x8xf32> to vector<4x8x1xf32>
    %127 = tpu.reciprocal %126 {approx = true} : vector<4x8x1xf32> -> vector<4x8x1xf32>
    %128 = vector.broadcast %127 : vector<4x8x1xf32> to vector<4x8x8xf32>
    %129 = arith.mulf %124, %128 : vector<4x8x8xf32>
    %130 = arith.truncf %129 : vector<4x8x8xf32> to vector<4x8x8xbf16>
    "tpu.trace_start"() <{level = 10 : i32, message = "hqk,hkd->hqd"}> : () -> ()
    %cst_71 = arith.constant dense<0.000000e+00> : vector<4x8x8xf32>
    %131 = tpu.matmul %130, %109, %cst_71 {dimension_numbers = #tpu.dot_dimension_numbers<[2], [1], [1], [2], [0, 0, 0, 1, 1, 2], [0], [0]>} : vector<4x8x8xbf16>, vector<4x8x8xbf16>, vector<4x8x8xf32> -> vector<4x8x8xf32>
    "tpu.trace_stop"() : () -> ()
    %132 = arith.truncf %131 : vector<4x8x8xf32> to vector<4x8x8xbf16>
    %c0_72 = arith.constant 0 : index
    %c0_73 = arith.constant 0 : index
    %c0_74 = arith.constant 0 : index
    %133 = vector.load %arg16[%c0_72, %c0_73, %c0_74] : memref<4x8x32xbf16, #tpu.memory_space<vmem>>, vector<4x8x32xbf16>
    "tpu.trace_start"() <{level = 10 : i32, message = "hqd,hdm->hqm"}> : () -> ()
    %cst_75 = arith.constant dense<0.000000e+00> : vector<4x8x32xf32>
    %134 = tpu.matmul %132, %133, %cst_75 {dimension_numbers = #tpu.dot_dimension_numbers<[2], [1], [1], [2], [0, 0, 0, 1, 1, 2], [0], [0]>} : vector<4x8x8xbf16>, vector<4x8x32xbf16>, vector<4x8x32xf32> -> vector<4x8x32xf32>
    "tpu.trace_stop"() : () -> ()
    %cst_76 = arith.constant dense<0.000000e+00> : vector<8x32xf32>
    %135 = vector.multi_reduction <add>, %134, %cst_76 [0] : vector<4x8x32xf32> to vector<8x32xf32>
    %136 = arith.addf %135, %88 : vector<8x32xf32>
    %c0_77 = arith.constant 0 : index
    %c0_78 = arith.constant 0 : index
    %137 = vector.load %arg17[%c0_77, %c0_78] : memref<1x32xf32, #tpu.memory_space<vmem>>, vector<1x32xf32>
    %c0_79 = arith.constant 0 : index
    %c0_80 = arith.constant 0 : index
    %138 = vector.load %arg18[%c0_79, %c0_80] : memref<1x32xf32, #tpu.memory_space<vmem>>, vector<1x32xf32>
    %cst_81 = arith.constant dense<0.000000e+00> : vector<8xf32>
    %139 = vector.multi_reduction <add>, %136, %cst_81 [1] : vector<8x32xf32> to vector<8xf32>
    %140 = vector.shape_cast %139 : vector<8xf32> to vector<8x1xf32>
    %cst_82 = arith.constant 3.200000e+01 : f32
    %141 = vector.broadcast %cst_82 : f32 to vector<8x1xf32>
    %142 = arith.divf %140, %141 : vector<8x1xf32>
    %143 = vector.broadcast %142 : vector<8x1xf32> to vector<8x32xf32>
    %144 = arith.subf %136, %143 : vector<8x32xf32>
    %145 = arith.mulf %144, %144 : vector<8x32xf32>
    %cst_83 = arith.constant dense<0.000000e+00> : vector<8xf32>
    %146 = vector.multi_reduction <add>, %145, %cst_83 [1] : vector<8x32xf32> to vector<8xf32>
    %147 = vector.shape_cast %146 : vector<8xf32> to vector<8x1xf32>
    %cst_84 = arith.constant 3.200000e+01 : f32
    %148 = vector.broadcast %cst_84 : f32 to vector<8x1xf32>
    %149 = arith.divf %147, %148 : vector<8x1xf32>
    %150 = vector.broadcast %142 : vector<8x1xf32> to vector<8x32xf32>
    %151 = arith.subf %136, %150 : vector<8x32xf32>
    %cst_85 = arith.constant 9.99999997E-7 : f32
    %152 = vector.broadcast %cst_85 : f32 to vector<8x1xf32>
    %153 = arith.addf %149, %152 : vector<8x1xf32>
    %154 = math.rsqrt %153 : vector<8x1xf32>
    %155 = vector.broadcast %154 : vector<8x1xf32> to vector<8x32xf32>
    %156 = arith.mulf %151, %155 : vector<8x32xf32>
    %157 = vector.broadcast %137 : vector<1x32xf32> to vector<8x32xf32>
    %158 = arith.mulf %156, %157 : vector<8x32xf32>
    %159 = vector.broadcast %138 : vector<1x32xf32> to vector<8x32xf32>
    %160 = arith.addf %158, %159 : vector<8x32xf32>
    %c0_86 = arith.constant 0 : index
    %c0_87 = arith.constant 0 : index
    %c0_88 = arith.constant 0 : index
    %c0_89 = arith.constant 0 : index
    %161 = vector.load %arg27[%c0_86, %c0_87, %c0_88, %c0_89] : memref<1x4x8x8xf32, #tpu.memory_space<vmem>>, vector<1x4x8x8xf32>
    %162 = vector.shape_cast %161 : vector<1x4x8x8xf32> to vector<4x8x8xf32>
    %163 = vector.shape_cast %129 : vector<4x8x8xf32> to vector<1x4x8x8xf32>
    tpu.vector_store %arg27[%c0_86, %c0_87, %c0_88, %c0_89], %163 {strides = array<i32>} : memref<1x4x8x8xf32, #tpu.memory_space<vmem>>, vector<1x4x8x8xf32>,
    %164 = vector.broadcast %1 : vector<8x1xf32> to vector<8x32xf32>
    %165 = arith.mulf %160, %164 : vector<8x32xf32>
    %166 = arith.truncf %165 : vector<8x32xf32> to vector<8x32xbf16>
    %c0_90 = arith.constant 0 : index
    %c0_91 = arith.constant 0 : index
    %167 = vector.load %arg19[%c0_90, %c0_91] : memref<32x64xbf16, #tpu.memory_space<vmem>>, vector<32x64xbf16>
    %cst_92 = arith.constant dense<0.000000e+00> : vector<8x64xf32>
    %168 = tpu.matmul %166, %167, %cst_92 {dimension_numbers = #tpu.dot_dimension_numbers<[1], [0], [0], [1], [0, 0, 1, 1], [], []>} : vector<8x32xbf16>, vector<32x64xbf16>, vector<8x64xf32> -> vector<8x64xf32>
    %c0_93 = arith.constant 0 : index
    %c0_94 = arith.constant 0 : index
    %169 = vector.load %arg20[%c0_93, %c0_94] : memref<1x64xf32, #tpu.memory_space<vmem>>, vector<1x64xf32>
    %170 = vector.broadcast %169 : vector<1x64xf32> to vector<8x64xf32>
    %171 = arith.addf %168, %170 : vector<8x64xf32>
    %cst_95 = arith.constant 0.000000e+00 : f32
    %172 = vector.broadcast %cst_95 : f32 to vector<8x64xf32>
    %173 = arith.maximumf %171, %172 : vector<8x64xf32>
    %174 = arith.truncf %173 : vector<8x64xf32> to vector<8x64xbf16>
    %c0_96 = arith.constant 0 : index
    %c0_97 = arith.constant 0 : index
    %175 = vector.load %arg21[%c0_96, %c0_97] : memref<64x32xbf16, #tpu.memory_space<vmem>>, vector<64x32xbf16>
    %cst_98 = arith.constant dense<0.000000e+00> : vector<8x32xf32>
    %176 = tpu.matmul %174, %175, %cst_98 {dimension_numbers = #tpu.dot_dimension_numbers<[1], [0], [0], [1], [0, 0, 1, 1], [], []>} : vector<8x64xbf16>, vector<64x32xbf16>, vector<8x32xf32> -> vector<8x32xf32>
    %c0_99 = arith.constant 0 : index
    %c0_100 = arith.constant 0 : index
    %177 = vector.load %arg22[%c0_99, %c0_100] : memref<1x32xf32, #tpu.memory_space<vmem>>, vector<1x32xf32>
    %178 = vector.broadcast %177 : vector<1x32xf32> to vector<8x32xf32>
    %179 = arith.addf %176, %178 : vector<8x32xf32>
    %180 = arith.addf %179, %165 : vector<8x32xf32>
    %c0_101 = arith.constant 0 : index
    %c0_102 = arith.constant 0 : index
    %181 = vector.load %arg23[%c0_101, %c0_102] : memref<1x32xf32, #tpu.memory_space<vmem>>, vector<1x32xf32>
    %c0_103 = arith.constant 0 : index
    %c0_104 = arith.constant 0 : index
    %182 = vector.load %arg24[%c0_103, %c0_104] : memref<1x32xf32, #tpu.memory_space<vmem>>, vector<1x32xf32>
    %cst_105 = arith.constant dense<0.000000e+00> : vector<8xf32>
    %183 = vector.multi_reduction <add>, %180, %cst_105 [1] : vector<8x32xf32> to vector<8xf32>
    %184 = vector.shape_cast %183 : vector<8xf32> to vector<8x1xf32>
    %cst_106 = arith.constant 3.200000e+01 : f32
    %185 = vector.broadcast %cst_106 : f32 to vector<8x1xf32>
    %186 = arith.divf %184, %185 : vector<8x1xf32>
    %187 = vector.broadcast %186 : vector<8x1xf32> to vector<8x32xf32>
    %188 = arith.subf %180, %187 : vector<8x32xf32>
    %189 = arith.mulf %188, %188 : vector<8x32xf32>
    %cst_107 = arith.constant dense<0.000000e+00> : vector<8xf32>
    %190 = vector.multi_reduction <add>, %189, %cst_107 [1] : vector<8x32xf32> to vector<8xf32>
    %191 = vector.shape_cast %190 : vector<8xf32> to vector<8x1xf32>
    %cst_108 = arith.constant 3.200000e+01 : f32
    %192 = vector.broadcast %cst_108 : f32 to vector<8x1xf32>
    %193 = arith.divf %191, %192 : vector<8x1xf32>
    %194 = vector.broadcast %186 : vector<8x1xf32> to vector<8x32xf32>
    %195 = arith.subf %180, %194 : vector<8x32xf32>
    %cst_109 = arith.constant 9.99999997E-7 : f32
    %196 = vector.broadcast %cst_109 : f32 to vector<8x1xf32>
    %197 = arith.addf %193, %196 : vector<8x1xf32>
    %198 = math.rsqrt %197 : vector<8x1xf32>
    %199 = vector.broadcast %198 : vector<8x1xf32> to vector<8x32xf32>
    %200 = arith.mulf %195, %199 : vector<8x32xf32>
    %201 = vector.broadcast %181 : vector<1x32xf32> to vector<8x32xf32>
    %202 = arith.mulf %200, %201 : vector<8x32xf32>
    %203 = vector.broadcast %182 : vector<1x32xf32> to vector<8x32xf32>
    %204 = arith.addf %202, %203 : vector<8x32xf32>
    %205 = vector.broadcast %1 : vector<8x1xf32> to vector<8x32xf32>
    %206 = arith.mulf %204, %205 : vector<8x32xf32>
    %c0_110 = arith.constant 0 : index
    %c0_111 = arith.constant 0 : index
    %c0_112 = arith.constant 0 : index
    %207 = vector.load %arg25[%c0_110, %c0_111, %c0_112] : memref<1x8x32xf32, #tpu.memory_space<vmem>>, vector<1x8x32xf32>
    %208 = vector.shape_cast %207 : vector<1x8x32xf32> to vector<8x32xf32>
    %209 = vector.shape_cast %206 : vector<8x32xf32> to vector<1x8x32xf32>
    tpu.vector_store %arg25[%c0_110, %c0_111, %c0_112], %209 {strides = array<i32>} : memref<1x8x32xf32, #tpu.memory_space<vmem>>, vector<1x8x32xf32>,
    return
  }
  func.func @transform_0(%arg0: i32) -> (i32, i32, i32) {
    %c0_i32 = arith.constant 0 : i32
    %c0_i32_0 = arith.constant 0 : i32
    %c0_i32_1 = arith.constant 0 : i32
    return %arg0, %c0_i32, %c0_i32_0 : i32, i32, i32
  }
  func.func @transform_1(%arg0: i32) -> (i32, i32, i32) {
    %c0_i32 = arith.constant 0 : i32
    %c0_i32_0 = arith.constant 0 : i32
    %c0_i32_1 = arith.constant 0 : i32
    return %arg0, %c0_i32, %c0_i32_0 : i32, i32, i32
  }
  func.func @transform_2(%arg0: i32) -> (i32, i32, i32) {
    %c0_i32 = arith.constant 0 : i32
    %c0_i32_0 = arith.constant 0 : i32
    %c0_i32_1 = arith.constant 0 : i32
    return %arg0, %c0_i32, %c0_i32_0 : i32, i32, i32
  }
  func.func @transform_3(%arg0: i32) -> (i32, i32, i32) {
    %c0_i32 = arith.constant 0 : i32
    %c0_i32_0 = arith.constant 0 : i32
    %c0_i32_1 = arith.constant 0 : i32
    return %arg0, %c0_i32, %c0_i32_0 : i32, i32, i32
  }
  func.func @transform_4(%arg0: i32) -> (i32, i32, i32) {
    %c0_i32 = arith.constant 0 : i32
    %c0_i32_0 = arith.constant 0 : i32
    %c0_i32_1 = arith.constant 0 : i32
    return %arg0, %c0_i32, %c0_i32_0 : i32, i32, i32
  }
  func.func @transform_5(%arg0: i32) -> (i32, i32, i32) {
    %c0_i32 = arith.constant 0 : i32
    %c0_i32_0 = arith.constant 0 : i32
    %c0_i32_1 = arith.constant 0 : i32
    %c0_i32_2 = arith.constant 0 : i32
    return %c0_i32, %c0_i32_0, %c0_i32_1 : i32, i32, i32
  }
  func.func @transform_6(%arg0: i32) -> (i32, i32, i32) {
    %c0_i32 = arith.constant 0 : i32
    %c0_i32_0 = arith.constant 0 : i32
    %c0_i32_1 = arith.constant 0 : i32
    %c0_i32_2 = arith.constant 0 : i32
    return %c0_i32, %c0_i32_0, %c0_i32_1 : i32, i32, i32
  }
  func.func @transform_7(%arg0: i32) -> (i32, i32, i32) {
    %c0_i32 = arith.constant 0 : i32
    %c0_i32_0 = arith.constant 0 : i32
    %c0_i32_1 = arith.constant 0 : i32
    %c0_i32_2 = arith.constant 0 : i32
    return %c0_i32, %c0_i32_0, %c0_i32_1 : i32, i32, i32
  }
  func.func @transform_8(%arg0: i32) -> (i32, i32, i32) {
    %c0_i32 = arith.constant 0 : i32
    %c0_i32_0 = arith.constant 0 : i32
    %c0_i32_1 = arith.constant 0 : i32
    %c0_i32_2 = arith.constant 0 : i32
    return %c0_i32, %c0_i32_0, %c0_i32_1 : i32, i32, i32
  }
  func.func @transform_9(%arg0: i32) -> (i32, i32, i32) {
    %c0_i32 = arith.constant 0 : i32
    %c0_i32_0 = arith.constant 0 : i32
    %c0_i32_1 = arith.constant 0 : i32
    %c0_i32_2 = arith.constant 0 : i32
    return %c0_i32, %c0_i32_0, %c0_i32_1 : i32, i32, i32
  }
  func.func @transform_10(%arg0: i32) -> (i32, i32) {
    %c0_i32 = arith.constant 0 : i32
    %c0_i32_0 = arith.constant 0 : i32
    %c0_i32_1 = arith.constant 0 : i32
    return %c0_i32, %c0_i32_0 : i32, i32
  }
  func.func @transform_11(%arg0: i32) -> (i32, i32) {
    %c0_i32 = arith.constant 0 : i32
    %c0_i32_0 = arith.constant 0 : i32
    %c0_i32_1 = arith.constant 0 : i32
    return %c0_i32, %c0_i32_0 : i32, i32
  }
  func.func @transform_12(%arg0: i32) -> (i32, i32, i32) {
    %c0_i32 = arith.constant 0 : i32
    %c0_i32_0 = arith.constant 0 : i32
    %c0_i32_1 = arith.constant 0 : i32
    %c0_i32_2 = arith.constant 0 : i32
    return %c0_i32, %c0_i32_0, %c0_i32_1 : i32, i32, i32
  }
  func.func @transform_13(%arg0: i32) -> (i32, i32, i32) {
    %c0_i32 = arith.constant 0 : i32
    %c0_i32_0 = arith.constant 0 : i32
    %c0_i32_1 = arith.constant 0 : i32
    %c0_i32_2 = arith.constant 0 : i32
    return %c0_i32, %c0_i32_0, %c0_i32_1 : i32, i32, i32
  }
  func.func @transform_14(%arg0: i32) -> (i32, i32, i32) {
    %c0_i32 = arith.constant 0 : i32
    %c0_i32_0 = arith.constant 0 : i32
    %c0_i32_1 = arith.constant 0 : i32
    %c0_i32_2 = arith.constant 0 : i32
    return %c0_i32, %c0_i32_0, %c0_i32_1 : i32, i32, i32
  }
  func.func @transform_15(%arg0: i32) -> (i32, i32, i32) {
    %c0_i32 = arith.constant 0 : i32
    %c0_i32_0 = arith.constant 0 : i32
    %c0_i32_1 = arith.constant 0 : i32
    %c0_i32_2 = arith.constant 0 : i32
    return %c0_i32, %c0_i32_0, %c0_i32_1 : i32, i32, i32
  }
  func.func @transform_16(%arg0: i32) -> (i32, i32) {
    %c0_i32 = arith.constant 0 : i32
    %c0_i32_0 = arith.constant 0 : i32
    %c0_i32_1 = arith.constant 0 : i32
    return %c0_i32, %c0_i32_0 : i32, i32
  }
  func.func @transform_17(%arg0: i32) -> (i32, i32) {
    %c0_i32 = arith.constant 0 : i32
    %c0_i32_0 = arith.constant 0 : i32
    %c0_i32_1 = arith.constant 0 : i32
    return %c0_i32, %c0_i32_0 : i32, i32
  }
  func.func @transform_18(%arg0: i32) -> (i32, i32) {
    %c0_i32 = arith.constant 0 : i32
    %c0_i32_0 = arith.constant 0 : i32
    %c0_i32_1 = arith.constant 0 : i32
    return %c0_i32, %c0_i32_0 : i32, i32
  }
  func.func @transform_19(%arg0: i32) -> (i32, i32) {
    %c0_i32 = arith.constant 0 : i32
    %c0_i32_0 = arith.constant 0 : i32
    %c0_i32_1 = arith.constant 0 : i32
    return %c0_i32, %c0_i32_0 : i32, i32
  }
  func.func @transform_20(%arg0: i32) -> (i32, i32) {
    %c0_i32 = arith.constant 0 : i32
    %c0_i32_0 = arith.constant 0 : i32
    %c0_i32_1 = arith.constant 0 : i32
    return %c0_i32, %c0_i32_0 : i32, i32
  }
  func.func @transform_21(%arg0: i32) -> (i32, i32) {
    %c0_i32 = arith.constant 0 : i32
    %c0_i32_0 = arith.constant 0 : i32
    %c0_i32_1 = arith.constant 0 : i32
    return %c0_i32, %c0_i32_0 : i32, i32
  }
  func.func @transform_22(%arg0: i32) -> (i32, i32) {
    %c0_i32 = arith.constant 0 : i32
    %c0_i32_0 = arith.constant 0 : i32
    %c0_i32_1 = arith.constant 0 : i32
    return %c0_i32, %c0_i32_0 : i32, i32
  }
  func.func @transform_23(%arg0: i32) -> (i32, i32) {
    %c0_i32 = arith.constant 0 : i32
    %c0_i32_0 = arith.constant 0 : i32
    %c0_i32_1 = arith.constant 0 : i32
    return %c0_i32, %c0_i32_0 : i32, i32
  }
  func.func @transform_24(%arg0: i32) -> (i32, i32, i32) {
    %c0_i32 = arith.constant 0 : i32
    %c0_i32_0 = arith.constant 0 : i32
    %c0_i32_1 = arith.constant 0 : i32
    return %arg0, %c0_i32, %c0_i32_0 : i32, i32, i32
  }
  func.func @transform_25(%arg0: i32) -> (i32, i32, i32, i32) {
    %c0_i32 = arith.constant 0 : i32
    %c0_i32_0 = arith.constant 0 : i32
    %c0_i32_1 = arith.constant 0 : i32
    %c0_i32_2 = arith.constant 0 : i32
    return %arg0, %c0_i32, %c0_i32_0, %c0_i32_1 : i32, i32, i32, i32
  }
  func.func @transform_26(%arg0: i32) -> (i32, i32, i32, i32) {
    %c0_i32 = arith.constant 0 : i32
    %c0_i32_0 = arith.constant 0 : i32
    %c0_i32_1 = arith.constant 0 : i32
    %c0_i32_2 = arith.constant 0 : i32
    return %arg0, %c0_i32, %c0_i32_0, %c0_i32_1 : i32, i32, i32, i32
  }
}

</mosaic_0001>

<bundles_post_ra>
// kernel: tpu_custom_call.1
= control target key start
LH: loop header
LB: loop body
LE: loop exit
PB: predicated region body
PF: predicated region fallthrough
CT: control target
= control target key end

     0   :  { %s5848_s0 = inlined_call_operand.vmem [shape: f32[2,8,32], index: 0, kind: input, shape index: {}]   ;;  %s5849_s1 = inlined_call_operand.vmem [shape: f32[2,8,32], index: 1, kind: input, shape index: {}]   ;;  %s5850_s2 = inlined_call_operand.vmem [shape: f32[2,8,1], index: 2, kind: input, shape index: {}]   ;;  %s5851_s3 = inlined_call_operand.vmem [shape: f32[2,1,8], index: 3, kind: input, shape index: {}]   ;;  %s5852_s4 = inlined_call_operand.vmem [shape: f32[2,1,8], index: 4, kind: input, shape index: {}]   ;;  %s5853_s5 = inlined_call_operand.vmem [shape: f32[4,8,8], index: 5, kind: input, shape index: {}]   ;;  %s5854_s6 = inlined_call_operand.vmem [shape: bf16[4,32,8], index: 6, kind: input, shape index: {}]   ;;  %s5855_s7 = inlined_call_operand.vmem [shape: bf16[4,32,8], index: 7, kind: input, shape index: {}]   ;;  %s5856_s8 = inlined_call_operand.vmem [shape: bf16[4,32,8], index: 8, kind: input, shape index: {}]   ;;  %s5857_s9 = inlined_call_operand.vmem [shape: bf16[4,8,32], index: 9, kind: input, shape index: {}]   ;;  %s5858_s10 = inlined_call_operand.vmem [shape: f32[1,32], index: 10, kind: input, shape index: {}]   ;;  %s5859_s11 = inlined_call_operand.vmem [shape: f32[1,32], index: 11, kind: input, shape index: {}]   ;;  %s5860_s12 = inlined_call_operand.vmem [shape: bf16[4,32,8], index: 12, kind: input, shape index: {}]   ;;  %s5861_s13 = inlined_call_operand.vmem [shape: bf16[4,32,8], index: 13, kind: input, shape index: {}]   ;;  %s5862_s14 = inlined_call_operand.vmem [shape: bf16[4,32,8], index: 14, kind: input, shape index: {}]   ;;  %s5863_s15 = inlined_call_operand.vmem [shape: bf16[4,8,32], index: 15, kind: input, shape index: {}]   ;;  %s5864_s16 = inlined_call_operand.vmem [shape: f32[1,32], index: 16, kind: input, shape index: {}]   ;;  %s5865_s17 = inlined_call_operand.vmem [shape: f32[1,32], index: 17, kind: input, shape index: {}]   ;;  %s5866_s18 = inlined_call_operand.vmem [shape: bf16[32,64], index: 18, kind: input, shape index: {}]   ;;  %s5867_s19 = inlined_call_operand.vmem [shape: f32[1,64], index: 19, kind: input, shape index: {}]   ;;  %s5868_s20 = inlined_call_operand.vmem [shape: bf16[64,32], index: 20, kind: input, shape index: {}]   ;;  %s5869_s21 = inlined_call_operand.vmem [shape: f32[1,32], index: 21, kind: input, shape index: {}]   ;;  %s5870_s22 = inlined_call_operand.vmem [shape: f32[1,32], index: 22, kind: input, shape index: {}]   ;;  %s5871_s23 = inlined_call_operand.vmem [shape: f32[1,32], index: 23, kind: input, shape index: {}]   ;;  %s5872_s24 = inlined_call_operand.hbm [shape: f32[2,8,32], index: 24, kind: output, shape index: {0}]   ;;  %s5873_s25 = inlined_call_operand.hbm [shape: f32[2,4,8,8], index: 25, kind: output, shape index: {1}]   ;;  %s5874_s26 = inlined_call_operand.hbm [shape: f32[2,4,8,8], index: 26, kind: output, shape index: {2}]  }
   0x1   :  { %5895 = sst [smem:[#allocation16_spill]] %s5848_s0 }
   0x2   :  { %5896 = sst [smem:[#allocation17_spill]] %s5849_s1 }
   0x3   :  { %5897 = sst [smem:[#allocation18_spill]] %s5850_s2 }
   0x4   :  { %5898 = sst [smem:[#allocation19_spill]] %s5851_s3 }
   0x5   :  { %5899 = sst [smem:[#allocation20_spill]] %s5852_s4 }
   0x6   :  { %5900 = sst [smem:[#allocation21_spill]] %s5853_s5 }
   0x7   :  { %5901 = sst [smem:[#allocation22_spill]] %s5854_s6 }
   0x8   :  { %5902 = sst [smem:[#allocation23_spill]] %s5855_s7 }
   0x9   :  { %5903 = sst [smem:[#allocation24_spill]] %s5856_s8 }
   0xa   :  { %5904 = sst [smem:[#allocation25_spill]] %s5857_s9 }
   0xb   :  { %5905 = sst [smem:[#allocation26_spill]] %s5858_s10 }
   0xc   :  { %5906 = sst [smem:[#allocation27_spill]] %s5859_s11 }
   0xd   :  { %5907 = sst [smem:[#allocation28_spill]] %s5860_s12 }
   0xe   :  { %32 = vsyncpa [#allocation3], 0 }
   0xf   :  { %34 = vsyncpa [#allocation3 + $0x1], 0 }
  0x10   :  { %35 = vsyncpa [#allocation5], 0 }
  0x11   :  { %37 = vsyncpa [#allocation5 + $0x1], 0  ;;  %s5038_s27 = smov 0   ;;  %s5040_s3 = smov 0  }
  0x12   :  { %s5042_s7 = smov 0   ;;  %s5044_s28 = smov 0  }
  0x13 LB: > { %5908 = sst [smem:[#allocation9_spill]] %s4881_s27  ;;  %s5059_s8 = sadd.s32 4294967295, %s4893_s28   ;;  %s4893_s28 = sphi %s5044_s28, %s5938_s28   ;;  %s4889_s7 = sphi %s5042_s7, %s5941_s7   ;;  %s4885_s3 = sphi %s5040_s3, %s5940_s3   ;;  %s4881_s27 = sphi %s5038_s27, %s5939_s27  }
  0x14   : > { %5909 = sst [smem:[#allocation10_spill]] %s4885_s3  ;;  %s5880_s4 = sadd.s32 4294967294, %s4893_s28  }
  0x15   : > { %5910 = sst [smem:[#allocation11_spill]] %s4889_s7  ;;  %s5063_s29 = sadd.s32 1, %s4893_s28  }
  0x16   : > { %5911 = sst [smem:[#allocation12_spill]] %s4893_s28  ;;  %s579_s0 = sadd.s32 1, %s4889_s7 }
  0x17   : > { %5912 = sst [smem:[#allocation13_spill]] %s5063_s29  ;;  %s576_s9 = ssub.s32 %s4893_s28, %s5063_s29 }
  0x18   : > { %p589_p0 = scmp.ne.s32.totalorder %s4889_s7, %s4885_s3  ;;  %p577_p1 = scmp.eq.s32.totalorder %s576_s9, 0 }
  0x19   : > { %p590_p2 = scmp.eq.s32.totalorder %s5059_s8, 1  ;;  %p595_p3 = scmp.ne.s32.totalorder %s4885_s3, %s4881_s27 }
  0x1a   : > { %p596_p4 = scmp.eq.s32.totalorder %s5880_s4, 1  ;;  %p4009_p7 = scmp.ge.s32.totalorder %s4893_s28, 1 }
  0x1b   : > { %s5076_s30 = scalar_select %p577_p1, %s4889_s7, %s579_s0  }
  0x1c   : > { %p5078_p5 = por %p590_p2, %p589_p0  ;;  %p5082_p6 = por %p596_p4, %p595_p3 }
  0x1d   : > { %5913 = sst [smem:[#allocation14_spill]] %s5076_s30  ;;  %p756_p8 = scmp.lt.s32.totalorder %s4893_s28, 3 }
  0x1e   : > { %s5915_s5 = scalar_select %p5082_p6, 1, 0 }
  0x1f   : > { %p757_p9 = pnand %p4009_p7, %p756_p8 }
  0x20   : > { %5916 = sst [smem:[#allocation15_spill]] %s5915_s5  ;;  %s5917_s1 = sld [smem:[#allocation22_spill]] (!%p757_p9)  ;;  %v4895_v1 = vmov (!%p757_p9), 0.0   ;;  %vm4896_vm0 = vmmov (!%p757_p9), 0   ;;  %vm901_vm1 = vcmask (!%p757_p9), 261120   ;;  %vm1569_vm2 = vcmask (!%p757_p9), 64512  }
  0x21   : > { %760 = sbr.rel (%p757_p9) target bundleno = 3866 (0xf1a), region = 116  ;;  %4268 = vmatprep.subr.bf16.mxu0 (!%p757_p9), %v4895_v1  ;;  %4276 = vmatprep.subr.bf16.mxu1 (!%p757_p9), %v4895_v1  ;;  %p849_p10 = scmp.lt.s32.totalorder (!%p757_p9), %s5059_s8, 1  ;;  %vm1824_vm3 = vcmask (!%p757_p9), 1043456   ;;  %vm3712_vm10 = vcmask (!%p757_p9), 523264  }
  0x22   : > { %4272 = vmatprep.mubr.msk.bf16.mxu0 (!%p757_p9), %vm4896_vm0, %v4895_v1  ;;  %4280 = vmatprep.mubr.msk.bf16.mxu1 (!%p757_p9), %vm4896_vm0, %v4895_v1  ;;  %s5918_s6 = sld [smem:[#allocation16_spill]] (!%p757_p9)  ;;  %s5919_s10 = sld [smem:[#allocation23_spill]] (!%p757_p9) }
  0x23   : > { %s5920_s9 = sld [smem:[#allocation24_spill]] (!%p757_p9)  ;;  %s5922_s27 = sld [smem:[#allocation21_spill]] (!%p757_p9) }
  0x24   : > { %s5928_s12 = sld [smem:[#allocation28_spill]] (!%p757_p9)  ;;  %s5930_s11 = sld [smem:[#allocation27_spill]] (!%p757_p9) }
  0x26   : > { %v4679_v0 = vld [vmem:[%s5917_s1] sm:$0xff] (!%p757_p9)   ;;  %v4680_v2 = vld [vmem:[%s5917_s1 + $0x10] sm:$0xff] (!%p757_p9)   ;;  %v4681_v3 = vld [vmem:[%s5917_s1 + $0x8] sm:$0xff] (!%p757_p9)  }
  0x27   : > { %4269 = vmatpush3.bf16.msra.mxu0 (!%p757_p9), %v4679_v0  ;;  %4277 = vmatpush3.bf16.msra.mxu1 (!%p757_p9), %v4680_v2  ;;  %v4682_v4 = vld [vmem:[%s5917_s1 + $0x18] sm:$0xff] (!%p757_p9)   ;;  %v4683_v5 = vld [vmem:[%s5917_s1 + $0x20] sm:$0xff] (!%p757_p9)   ;;  %v4684_v6 = vld [vmem:[%s5917_s1 + $0x30] sm:$0xff] (!%p757_p9)  }
  0x28   : > { %4270 = vmatprep.subr.bf16.mxu0 %v4895_v1  ;;  %4278 = vmatprep.subr.bf16.mxu1 %v4895_v1  ;;  %s5110_s0 = scalar_select %p849_p10, %s5059_s8, 1  ;;  %v4685_v9 = vld [vmem:[%s5917_s1 + $0x28] sm:$0xff]   ;;  %v4686_v10 = vld [vmem:[%s5917_s1 + $0x38] sm:$0xff]   ;;  %v4687_v11 = vld [vmem:[%s5919_s10] sm:$0xff]  }
  0x29   : > { %v4688_v12 = vld [vmem:[%s5919_s10 + $0x10] sm:$0xff]   ;;  %v4689_v13 = vld [vmem:[%s5919_s10 + $0x8] sm:$0xff]   ;;  %v4690_v14 = vld [vmem:[%s5919_s10 + $0x18] sm:$0xff]  }
  0x2a   : > { %s5113_s4 = sshll.u32 %s5110_s0, 3  ;;  %v4691_v15 = vld [vmem:[%s5919_s10 + $0x20] sm:$0xff]   ;;  %v4692_v16 = vld [vmem:[%s5919_s10 + $0x30] sm:$0xff]   ;;  %v4693_v17 = vld [vmem:[%s5919_s10 + $0x28] sm:$0xff]  }
  0x2b   : > { %4271 = vmatpush3.bf16.msra.mxu0 %v4681_v3  ;;  %4279 = vmatpush3.bf16.msra.mxu1 %v4682_v4  ;;  %s852_s29 = scalar_lea.vmem %s5918_s6, %s5113_s4  ;;  %v4694_v18 = vld [vmem:[%s5919_s10 + $0x38] sm:$0xff]   ;;  %v4695_v19 = vld [vmem:[%s5920_s9] sm:$0xff]   ;;  %v4696_v20 = vld [vmem:[%s5920_s9 + $0x10] sm:$0xff]   ;;  %s5921_s6 = sld [smem:[#allocation19_spill]] }
  0x2c   : > { %4284 = vmatprep.subr.bf16.mxu0 %v4895_v1  ;;  %v5126_v7 = vld [vmem:[%s852_s29] sm:$0xff]  ;;  %4292 = vmatprep.subr.bf16.mxu1 %v4895_v1  ;;  %v4697_v21 = vld [vmem:[%s5920_s9 + $0x8] sm:$0xff]   ;;  %v4698_v22 = vld [vmem:[%s5920_s9 + $0x18] sm:$0xff]   ;;  %s5923_s29 = smov %s5922_s27  ;;  %s5926_s10 = sld [smem:[#allocation25_spill]] }
  0x2d   : > { %v5131_v8 = vpack.c.bf16 %v5126_v7, %v5126_v7  ;;  %v4699_v23 = vld [vmem:[%s5920_s9 + $0x20] sm:$0xff]   ;;  %v4700_v24 = vld [vmem:[%s5920_s9 + $0x30] sm:$0xff]   ;;  %v4701_v25 = vld [vmem:[%s5920_s9 + $0x28] sm:$0xff]  }
  0x2e   : > { %v4702_v26 = vld [vmem:[%s5920_s9 + $0x38] sm:$0xff]  }
  0x2f   : > { %4273 = vmatmul.mubr.msk.bf16.vlgmr.msra.gmra.mrb[0].mxu0 %vm901_vm1, %v5131_v8  ;;  %4281 = vmatmul.mubr.msk.bf16.vlgmr.msra.gmra.mrb[0].mxu1 %vm901_vm1, %v5131_v8 }
  0x30   : > { %4285 = vmatpush3.bf16.msra.mxu0 %v4683_v5  ;;  %4293 = vmatpush3.bf16.msra.mxu1 %v4684_v6 }
  0x31   : > { %4286 = vmatprep.subr.bf16.mxu0 %v4895_v1  ;;  %4294 = vmatprep.subr.bf16.mxu1 %v4895_v1  ;;  %s863_s7 = scalar_lea.vmem %s5921_s6, %s5110_s0  ;;  %s5929_s6 = sld [smem:[#allocation26_spill]] }
  0x32   : > { %4288 = vmatprep.mubr.msk.bf16.mxu0 %vm4896_vm0, %v4895_v1  ;;  %4296 = vmatprep.mubr.msk.bf16.mxu1 %vm4896_vm0, %v4895_v1 }
  0x34   : > { %4287 = vmatpush3.bf16.msra.mxu0 %v4685_v9  ;;  %4295 = vmatpush3.bf16.msra.mxu1 %v4686_v10 }
  0x35   : > { %4300 = vmatprep.subr.bf16.mxu0 %v4895_v1  ;;  %4308 = vmatprep.subr.bf16.mxu1 %v4895_v1 }
  0x37   : > { %4289 = vmatmul.mubr.msk.bf16.vlgmr.msra.gmra.mrb[4].mxu0 %vm901_vm1, %v5131_v8  ;;  %4297 = vmatmul.mubr.msk.bf16.vlgmr.msra.gmra.mrb[4].mxu1 %vm901_vm1, %v5131_v8 }
  0x38   : > { %4301 = vmatpush3.bf16.msra.mxu0 %v4687_v11  ;;  %4309 = vmatpush3.bf16.msra.mxu1 %v4688_v12 }
  0x39   : > { %4302 = vmatprep.subr.bf16.mxu0 %v4895_v1  ;;  %4310 = vmatprep.subr.bf16.mxu1 %v4895_v1 }
  0x3a   : > { %4304 = vmatprep.mubr.msk.bf16.mxu0 %vm4896_vm0, %v4895_v1  ;;  %4312 = vmatprep.mubr.msk.bf16.mxu1 %vm4896_vm0, %v4895_v1 }
  0x3c   : > { %4303 = vmatpush3.bf16.msra.mxu0 %v4689_v13  ;;  %4311 = vmatpush3.bf16.msra.mxu1 %v4690_v14 }
  0x3d   : > { %4316 = vmatprep.subr.bf16.mxu0 %v4895_v1  ;;  %4324 = vmatprep.subr.bf16.mxu1 %v4895_v1 }
  0x3f   : > { %4305 = vmatmul.mubr.msk.bf16.vlgmr.msra.gmra.mrb[8].mxu0 %vm901_vm1, %v5131_v8  ;;  %4313 = vmatmul.mubr.msk.bf16.vlgmr.msra.gmra.mrb[8].mxu1 %vm901_vm1, %v5131_v8 }
  0x40   : > { %4317 = vmatpush3.bf16.msra.mxu0 %v4691_v15  ;;  %4325 = vmatpush3.bf16.msra.mxu1 %v4692_v16 }
  0x41   : > { %4318 = vmatprep.subr.bf16.mxu0 %v4895_v1  ;;  %4326 = vmatprep.subr.bf16.mxu1 %v4895_v1 }
  0x42   : > { %4320 = vmatprep.mubr.msk.bf16.mxu0 %vm4896_vm0, %v4895_v1  ;;  %4328 = vmatprep.mubr.msk.bf16.mxu1 %vm4896_vm0, %v4895_v1 }
  0x44   : > { %4319 = vmatpush3.bf16.msra.mxu0 %v4693_v17  ;;  %4327 = vmatpush3.bf16.msra.mxu1 %v4694_v18 }
  0x45   : > { %4332 = vmatprep.subr.bf16.mxu0 %v4895_v1  ;;  %4340 = vmatprep.subr.bf16.mxu1 %v4895_v1 }
  0x47   : > { %4321 = vmatmul.mubr.msk.bf16.vlgmr.msra.gmra.mrb[12].mxu0 %vm901_vm1, %v5131_v8  ;;  %4329 = vmatmul.mubr.msk.bf16.vlgmr.msra.gmra.mrb[12].mxu1 %vm901_vm1, %v5131_v8 }
  0x48   : > { %4333 = vmatpush3.bf16.msra.mxu0 %v4695_v19  ;;  %4341 = vmatpush3.bf16.msra.mxu1 %v4696_v20 }
  0x49   : > { %4334 = vmatprep.subr.bf16.mxu0 %v4895_v1  ;;  %4342 = vmatprep.subr.bf16.mxu1 %v4895_v1 }
  0x4a   : > { %4336 = vmatprep.mubr.msk.bf16.mxu0 %vm4896_vm0, %v4895_v1  ;;  %4344 = vmatprep.mubr.msk.bf16.mxu1 %vm4896_vm0, %v4895_v1 }
  0x4c   : > { %4335 = vmatpush3.bf16.msra.mxu0 %v4697_v21  ;;  %4343 = vmatpush3.bf16.msra.mxu1 %v4698_v22 }
  0x4d   : > { %4348 = vmatprep.subr.bf16.mxu0 %v4895_v1  ;;  %4356 = vmatprep.subr.bf16.mxu1 %v4895_v1 }
  0x4f   : > { %4337 = vmatmul.mubr.msk.bf16.vlgmr.msra.gmra.mrb[16].mxu0 %vm901_vm1, %v5131_v8  ;;  %4345 = vmatmul.mubr.msk.bf16.vlgmr.msra.gmra.mrb[16].mxu1 %vm901_vm1, %v5131_v8 }
  0x50   : > { %4349 = vmatpush3.bf16.msra.mxu0 %v4699_v23  ;;  %4352 = vmatprep.mubr.msk.bf16.mxu0 %vm4896_vm0, %v4895_v1 }
  0x51   : > { %4350 = vmatprep.subr.bf16.mxu0 %v4895_v1  ;;  %4357 = vmatpush3.bf16.msra.mxu1 %v4700_v24 }
  0x52   : > { %4360 = vmatprep.mubr.msk.bf16.mxu1 %vm4896_vm0, %v4895_v1  ;;  %4358 = vmatprep.subr.bf16.mxu1 %v4895_v1 }
  0x54   : > { %4351 = vmatpush3.bf16.msra.mxu0 %v4701_v25 }
  0x55   : > { %4359 = vmatpush3.bf16.msra.mxu1 %v4702_v26  ;;  %4364 = vmatprep.subr.bf16.mxu0 %v4895_v1 }
  0x56   : > { %4370 = vmatprep.subr.bf16.mxu1 %v4895_v1 }
  0x57   : > { %4353 = vmatmul.mubr.msk.bf16.vlgmr.msra.gmra.mrb[20].mxu0 %vm901_vm1, %v5131_v8 }
  0x58   : > { %4361 = vmatmul.mubr.msk.bf16.vlgmr.msra.gmra.mrb[20].mxu1 %vm901_vm1, %v5131_v8  ;;  %4366 = vmatprep.mubr.msk.bf16.mxu0 %vm4896_vm0, %v4895_v1 }
  0x59   : > { %4372 = vmatprep.mubr.msk.bf16.mxu1 %vm4896_vm0, %v4895_v1 }
 0x102   : > { %v939_v27 = vpop.f32.mrb[0].mxu0  ;;  %v991_v28 = vpop.f32.mrb[0].mxu1 }
 0x103   : > { %v4274_v29 = vpop.f32.mrb[1].mxu0  ;;  %v4282_v30 = vpop.f32.mrb[1].mxu1  ;;  %v1549_v55 = vmul.f32 0.35355338, %v939_v27  ;;  %v1550_v56 = vmul.f32 0.35355338, %v991_v28 }
 0x104   : > { %v942_v31 = vpop.f32.mrb[2].mxu0  ;;  %v994_v32 = vpop.f32.mrb[2].mxu1 }
 0x105   : > { %v4275_v33 = vpop.f32.mrb[3].mxu0  ;;  %v4283_v34 = vpop.f32.mrb[3].mxu1  ;;  %v1553_v59 = vpack.c.bf16 %v1549_v55, %v1549_v55  ;;  %v1554_v60 = vpack.c.bf16 %v1550_v56, %v1550_v56 }
 0x106   : > { %v4897_v33 = vmov 0   ;;  %v1756_v34 = vlaneseq }
 0x107   : > { %4678 = vset.pattern.permute.xlu0 %v4897_v33 }
 0x10a   : > { %v1043_v35 = vpop.f32.mrb[4].mxu0  ;;  %v1095_v36 = vpop.f32.mrb[4].mxu1 }
 0x10b   : > { %v4290_v37 = vpop.f32.mrb[5].mxu0  ;;  %v4298_v38 = vpop.f32.mrb[5].mxu1  ;;  %v1551_v9 = vmul.f32 0.35355338, %v1043_v35  ;;  %v1552_v10 = vmul.f32 0.35355338, %v1095_v36 }
 0x10c   : > { %v1046_v39 = vpop.f32.mrb[6].mxu0  ;;  %v1098_v40 = vpop.f32.mrb[6].mxu1  ;;  %v871_v35 = vld [vmem:[%s863_s7] sm:$0x1]  ;;  %v5288_v36 = vshrl.u32 %v1756_v34, 7  ;;  %s5932_s7 = sld [smem:[#allocation20_spill]] }
 0x10d   : > { %v4291_v41 = vpop.f32.mrb[7].mxu0  ;;  %v4299_v42 = vpop.f32.mrb[7].mxu1  ;;  %v1555_v11 = vpack.c.bf16 %v1551_v9, %v1551_v9  ;;  %v1556_v12 = vpack.c.bf16 %v1552_v10, %v1552_v10  ;;  %vm1754_vm4 = vcmp.ne.f32.partialorder %v871_v35, 0.0  ;;  %v1764_v40 = vand.u32 127, %v1756_v34 }
 0x10e   : > { %v1758_v37 = vsub.s32 0, %v5288_v36  ;;  %v1755_v38 = vsel %vm1754_vm4, 1, %v4897_v33  ;;  %v1565_v41 = vld [vmem:[%s5922_s27] sm:$0xff]  ;;  %v1566_v42 = vld [vmem:[%s5923_s29 + $0x8] sm:$0xff]  ;;  %s5328_s27 = sand.u32 1, %s4885_s3  }
 0x10f   : > { %vm1765_vm6 = vcmp.ge.s32.totalorder %v5288_v36, %v1764_v40  ;;  %s5888_s1 = sshll.u32 %s5328_s27, 5 }
 0x110   : > { %v1759_v39 = vrot.slane %v1755_v38, %v1758_v37  ;;  %s5335_s5 = scalar_lea.vmem [#allocation4], %s5888_s1  ;;  %s5927_s1 = sld [smem:[#allocation18_spill]] }
 0x112   : > { %v1163_v43 = vpop.f32.mrb[8].mxu0  ;;  %v1215_v44 = vpop.f32.mrb[8].mxu1  ;;  %vm1760_vm5 = vcmp.eq.s32.totalorder %v1759_v39, 1  ;;  %s866_s28 = scalar_lea.vmem %s5932_s7, %s5110_s0  ;;  %s5933_s0 = sshll.u32 %s5328_s27, 5 }
 0x113   : > { %v1557_v45 = vpack.c.bf16 %v1163_v43, %v1163_v43  ;;  %v1558_v46 = vpack.c.bf16 %v1215_v44, %v1215_v44  ;;  %v4306_v47 = vpop.f32.mrb[9].mxu0  ;;  %v4314_v48 = vpop.f32.mrb[9].mxu1  ;;  %vm5301_vm7 = vmand %vm1760_vm5, %vm1765_vm6  ;;  %s5606_s9 = scalar_lea.vmem [#allocation6], %s5933_s0  ;;  %s4138_s0 = sshll.u32 %s5059_s8, 9 }
 0x114   : > { %v1166_v49 = vpop.f32.mrb[10].mxu0  ;;  %v1218_v50 = vpop.f32.mrb[10].mxu1 }
 0x115   : > { %v1574_v51 = vsel %vm1569_vm2, %v1557_v45, 0  ;;  %v1620_v52 = vsel %vm1569_vm2, %v1558_v46, 0  ;;  %v4307_v53 = vpop.f32.mrb[11].mxu0  ;;  %v4315_v54 = vpop.f32.mrb[11].mxu1 }
 0x116   : > { %4365 = vmatpush3.bf16.xpose.msra.mxu0 %v1574_v51  ;;  %4371 = vmatpush3.bf16.xpose.msra.mxu1 %v1620_v52  ;;  %s860_s30 = scalar_lea.vmem %s5927_s1, %s5113_s4  ;;  %s5722_s1 = scalar_lea.hbm %s5873_s25, %s4138_s0 }
 0x117   : > { %4376 = vmatprep.subr.bf16.mxu0 %v4895_v1  ;;  %4382 = vmatprep.subr.bf16.mxu1 %v4895_v1 }
 0x11a   : > { %v1267_v57 = vpop.f32.mrb[12].mxu0  ;;  %v1319_v58 = vpop.f32.mrb[12].mxu1 }
 0x11b   : > { %v1559_v61 = vpack.c.bf16 %v1267_v57, %v1267_v57  ;;  %v1560_v62 = vpack.c.bf16 %v1319_v58, %v1319_v58  ;;  %v4322_v63 = vpop.f32.mrb[13].mxu0  ;;  %v4330_v0 = vpop.f32.mrb[13].mxu1  ;;  %v1567_v57 = vld [vmem:[%s5923_s29 + $0x10] sm:$0xff]  ;;  %v1568_v58 = vld [vmem:[%s5923_s29 + $0x18] sm:$0xff] }
 0x11c   : > { %v1270_v2 = vpop.f32.mrb[14].mxu0  ;;  %v1322_v3 = vpop.f32.mrb[14].mxu1 }
 0x11d   : > { %v1666_v4 = vsel %vm1569_vm2, %v1559_v61, 0  ;;  %v1712_v5 = vsel %vm1569_vm2, %v1560_v62, 0  ;;  %v4323_v6 = vpop.f32.mrb[15].mxu0  ;;  %4367 = vmatmul.mubr.msk.bf16.vlgmr.msra.gmra.mrb[24].mxu0 %vm1569_vm2, %v1553_v59  ;;  %4373 = vmatmul.mubr.msk.bf16.vlgmr.msra.gmra.mrb[24].mxu1 %vm1569_vm2, %v1554_v60  ;;  %v4331_v8 = vpop.f32.mrb[15].mxu1 }
 0x11e   : > { %4377 = vmatpush3.bf16.xpose.msra.mxu0 %v1666_v4  ;;  %4383 = vmatpush3.bf16.xpose.msra.mxu1 %v1712_v5 }
 0x11f   : > { %4378 = vmatprep.mubr.msk.bf16.mxu0 %vm4896_vm0, %v4895_v1  ;;  %4384 = vmatprep.mubr.msk.bf16.mxu1 %vm4896_vm0, %v4895_v1 }
 0x120   : > { %4388 = vmatprep.subr.bf16.mxu0 %v4895_v1  ;;  %4394 = vmatprep.subr.bf16.mxu1 %v4895_v1 }
 0x122   : > { %v1387_v13 = vpop.f32.mrb[16].mxu0  ;;  %v1439_v17 = vpop.f32.mrb[16].mxu1 }
 0x123   : > { %v1561_v14 = vpack.c.bf16 %v1387_v13, %v1387_v13  ;;  %v4338_v15 = vpop.f32.mrb[17].mxu0  ;;  %v1562_v20 = vpack.c.bf16 %v1439_v17, %v1439_v17  ;;  %v4346_v21 = vpop.f32.mrb[17].mxu1 }
 0x124   : > { %v1390_v16 = vpop.f32.mrb[18].mxu0  ;;  %v1442_v22 = vpop.f32.mrb[18].mxu1 }
 0x125   : > { %4379 = vmatmul.mubr.msk.bf16.vlgmr.msra.gmra.mrb[28].mxu0 %vm1569_vm2, %v1555_v11  ;;  %4385 = vmatmul.mubr.msk.bf16.vlgmr.msra.gmra.mrb[28].mxu1 %vm1569_vm2, %v1556_v12  ;;  %v1826_v18 = vsel %vm1824_vm3, %v1561_v14, 0  ;;  %v4339_v19 = vpop.f32.mrb[19].mxu0  ;;  %v1872_v23 = vsel %vm1824_vm3, %v1562_v20, 0  ;;  %v4347_v24 = vpop.f32.mrb[19].mxu1 }
 0x126   : > { %4390 = vmatprep.mubr.msk.bf16.mxu0 %vm4896_vm0, %v4895_v1  ;;  %4396 = vmatprep.mubr.msk.bf16.mxu1 %vm4896_vm0, %v4895_v1 }
 0x127   : > { %4389 = vmatpush3.bf16.msra.mxu0 %v1826_v18  ;;  %4395 = vmatpush3.bf16.msra.mxu1 %v1872_v23 }
 0x128   : > { %4400 = vmatprep.subr.bf16.mxu0 %v4895_v1  ;;  %4406 = vmatprep.subr.bf16.mxu1 %v4895_v1 }
 0x12a   : > { %v5279_v25 = vpop.f32.mrb[20].mxu0 }
 0x12b   : > { %v5281_v26 = vpop.f32.mrb[20].mxu1  ;;  %v4354_v27 = vpop.f32.mrb[21].mxu0 }
 0x12c   : > { %v4362_v28 = vpop.f32.mrb[21].mxu1  ;;  %v1494_v29 = vpop.f32.mrb[22].mxu0 }
 0x12d   : > { %v1546_v30 = vpop.f32.mrb[22].mxu1  ;;  %v4355_v31 = vpop.f32.mrb[23].mxu0 }
 0x12e   : > { %v4363_v32 = vpop.f32.mrb[23].mxu1 }
 0x1f0   : > { %v1610_v43 = vpop.f32.mrb[24].mxu0  ;;  %v1656_v44 = vpop.f32.mrb[24].mxu1 }
 0x1f1   : > { %v1611_v46 = vadd.f32 %v1610_v43, %v1565_v41  ;;  %v1657_v47 = vadd.f32 %v1656_v44, %v1566_v42  ;;  %v4368_v48 = vpop.f32.mrb[25].mxu0  ;;  %v4374_v49 = vpop.f32.mrb[25].mxu1  ;;  %v1563_v41 = vpack.c.bf16 %v5279_v25, %v5279_v25 }
 0x1f2   : > { %v1613_v50 = vpop.f32.mrb[26].mxu0  ;;  %v1659_v51 = vpop.f32.mrb[26].mxu1 }
 0x1f3   : > { %v4369_v52 = vpop.f32.mrb[27].mxu0  ;;  %v4375_v53 = vpop.f32.mrb[27].mxu1  ;;  %v1769_v54 = vsel %vm5301_vm7, %v1611_v46, -1e+09  ;;  %v1770_v56 = vsel %vm5301_vm7, %v1657_v47, -1e+09  ;;  %v1564_v47 = vpack.c.bf16 %v5281_v26, %v5281_v26 }
 0x1f4   : > { %v1773_v55 = vsel %vm1569_vm2, %v1769_v54, -inf  ;;  %v1776_v61 = vsel %vm1569_vm2, %v1770_v56, -inf  ;;  %v1918_v46 = vsel %vm1824_vm3, %v1563_v41, 0  ;;  %v2010_v50 = vld [vmem:[%s5926_s10] sm:$0xf] }
 0x1f5   : > { %1774 = vmax.xlane.f32.xlu0 %v1773_v55  ;;  %v1964_v26 = vsel %vm1824_vm3, %v1564_v47, 0  ;;  %v2018_v53 = vsel %vm1824_vm3, %v2010_v50, 0  ;;  %v868_v50 = vld [vmem:[%s860_s30] sm:$0xff]  ;;  %s3825_s30 = sshll.u32 %s5335_s5, 4  ;;  %s5725_s30 = int_to_ptr.vmem [resolvable:$true] %s3825_s30 }
 0x1f8   : > { %v1702_v59 = vpop.f32.mrb[28].mxu0  ;;  %v1748_v60 = vpop.f32.mrb[28].mxu1 }
 0x1f9   : > { %v1703_v62 = vadd.f32 %v1702_v59, %v1567_v57  ;;  %v1749_v63 = vadd.f32 %v1748_v60, %v1568_v58  ;;  %v4386_v0 = vpop.f32.mrb[29].mxu1  ;;  %1777 = vmax.xlane.f32.xlu0 %v1776_v61  ;;  %v4380_v2 = vpop.f32.mrb[29].mxu0  ;;  %v2011_v57 = vld [vmem:[%s5926_s10 + $0x4] sm:$0xf]  ;;  %v2012_v59 = vld [vmem:[%s5926_s10 + $0x8] sm:$0xf] }
 0x1fa   : > { %v1705_v3 = vpop.f32.mrb[30].mxu0  ;;  %v1751_v4 = vpop.f32.mrb[30].mxu1  ;;  %v2064_v58 = vsel %vm1824_vm3, %v2011_v57, 0  ;;  %v2013_v2 = vld [vmem:[%s5926_s10 + $0xc] sm:$0xf]  ;;  %v4706_v57 = vld [vmem:[%s5928_s12 + $0x18] sm:$0xff]  }
 0x1fb   : > { %v4381_v5 = vpop.f32.mrb[31].mxu0  ;;  %v4387_v6 = vpop.f32.mrb[31].mxu1  ;;  %v1771_v8 = vsel %vm5301_vm7, %v1703_v62, -1e+09  ;;  %v1772_v10 = vsel %vm5301_vm7, %v1749_v63, -1e+09 }
 0x1fc   : > { %v1779_v9 = vsel %vm1569_vm2, %v1771_v8, -inf  ;;  %v1782_v11 = vsel %vm1569_vm2, %v1772_v10, -inf  ;;  %v2110_v63 = vsel %vm1824_vm3, %v2012_v59, 0  ;;  %s5931_s10 = sld [smem:[#allocation17_spill]] }
 0x1fd   : > { %1780 = vmax.xlane.f32.xlu1 %v1779_v9 }
 0x201   : > { %1783 = vmax.xlane.f32.xlu1 %v1782_v11 }
 0x282   : > { %v1775_v12 = vpop.xlane.xlu0 %1774 }
 0x283   : > { %v1785_v13 = vsub.f32 %v1769_v54, %v1775_v12 }
 0x285   : > { %v1789_v14 = vmul.f32 1.442695, %v1785_v13 }
 0x286   : > { %v1778_v15 = vpop.xlane.xlu0 %1777 }
 0x287   : > { %4733 = vpow2.f32 %v1789_v14  ;;  %v1786_v16 = vsub.f32 %v1770_v56, %v1778_v15 }
 0x289   : > { %v1791_v17 = vmul.f32 1.442695, %v1786_v16 }
 0x28a   : > { %v1781_v18 = vpop.xlane.xlu1 %1780 }
 0x28b   : > { %4735 = vpow2.f32 %v1791_v17  ;;  %v1787_v19 = vsub.f32 %v1771_v8, %v1781_v18  ;;  %v2156_v8 = vsel %vm1824_vm3, %v2013_v2, 0 }
 0x28d   : > { %v1793_v20 = vmul.f32 1.442695, %v1787_v19 }
 0x28e   : > { %v1784_v21 = vpop.xlane.xlu1 %1783 }
 0x28f   : > { %4737 = vpow2.f32 %v1793_v20  ;;  %v1788_v22 = vsub.f32 %v1772_v10, %v1784_v21 }
 0x291   : > { %v4734_v23 = vpop.eup %4733  ;;  %v1795_v24 = vmul.f32 1.442695, %v1788_v22 }
 0x292   : > { %v1797_v27 = vsel %vm1569_vm2, %v4734_v23, 0.0 }
 0x293   : > { %4739 = vpow2.f32 %v1795_v24  ;;  %1798 = vadd.xlane.f32.xlu0 %v1797_v27 }
 0x295   : > { %v4736_v28 = vpop.eup %4735 }
 0x296   : > { %v1800_v29 = vsel %vm1569_vm2, %v4736_v28, 0.0 }
 0x297   : > { %1801 = vadd.xlane.f32.xlu1 %v1800_v29 }
 0x299   : > { %v4738_v30 = vpop.eup %4737 }
 0x29a   : > { %v1803_v31 = vsel %vm1569_vm2, %v4738_v30, 0.0 }
 0x29b   : > { %1804 = vadd.xlane.f32.xlu0 %v1803_v31 }
 0x29d   : > { %v4740_v32 = vpop.eup %4739 }
 0x29e   : > { %v1806_v34 = vsel %vm1569_vm2, %v4740_v32, 0.0 }
 0x29f   : > { %1807 = vadd.xlane.f32.xlu1 %v1806_v34 }
 0x320   : > { %v1799_v35 = vpop.xlane.xlu0 %1798 }
 0x321   : > { %4741 = vrcp.f32 %v1799_v35 }
 0x324   : > { %v1802_v38 = vpop.xlane.xlu1 %1801 }
 0x325   : > { %4743 = vrcp.f32 %v1802_v38 }
 0x328   : > { %v1805_v39 = vpop.xlane.xlu0 %1804 }
 0x329   : > { %4745 = vrcp.f32 %v1805_v39 }
 0x32b   : > { %v4742_v40 = vpop.eup %4741 }
 0x32c   : > { %v1813_v42 = vmul.f32 %v4742_v40, %v4734_v23  ;;  %v1808_v43 = vpop.xlane.xlu1 %1807 }
 0x32d   : > { %4747 = vrcp.f32 %v1808_v43 }
 0x32e   : > { %2236 = vst.msk [vmem:[%s5335_s5] sm:$0xff] %vm1569_vm2, %v1813_v42  ;;  %v1817_v44 = vpack.c.bf16 %v1813_v42, %v1813_v42 }
 0x32f   : > { %v4744_v45 = vpop.eup %4743 }
 0x330   : > { %v1814_v48 = vmul.f32 %v4744_v45, %v4736_v28  ;;  %4391 = vmatmul.mubr.msk.bf16.vlgmr.msra.gmra.mrb[32].mxu0 %vm1569_vm2, %v1817_v44 }
 0x331   : > { %4401 = vmatpush3.bf16.msra.mxu0 %v1918_v46  ;;  %4402 = vmatprep.mubr.msk.bf16.mxu0 %vm4896_vm0, %v4895_v1 }
 0x332   : > { %2237 = vst.msk [vmem:[%s5335_s5 + $0x8] sm:$0xff] %vm1569_vm2, %v1814_v48  ;;  %v1818_v25 = vpack.c.bf16 %v1814_v48, %v1814_v48  ;;  %4412 = vmatprep.subr.bf16.mxu0 %v4895_v1 }
 0x333   : > { %v4746_v49 = vpop.eup %4745 }
 0x334   : > { %v1815_v51 = vmul.f32 %v4746_v49, %v4738_v30  ;;  %4397 = vmatmul.mubr.msk.bf16.vlgmr.msra.gmra.mrb[32].mxu1 %vm1569_vm2, %v1818_v25 }
 0x335   : > { %4407 = vmatpush3.bf16.msra.mxu1 %v1964_v26  ;;  %4408 = vmatprep.mubr.msk.bf16.mxu1 %vm4896_vm0, %v4895_v1 }
 0x336   : > { %2238 = vst.msk [vmem:[%s5335_s5 + $0x10] sm:$0xff] %vm1569_vm2, %v1815_v51  ;;  %v1819_v52 = vpack.c.bf16 %v1815_v51, %v1815_v51  ;;  %4418 = vmatprep.subr.bf16.mxu1 %v4895_v1 }
 0x337   : > { %v4748_v54 = vpop.eup %4747 }
 0x338   : > { %v1816_v55 = vmul.f32 %v4748_v54, %v4740_v32  ;;  %4403 = vmatmul.mubr.msk.bf16.vlgmr.msra.gmra.mrb[36].mxu0 %vm1569_vm2, %v1819_v52 }
 0x339   : > { %4413 = vmatpush3.bf16.msra.mxu0 %v2018_v53  ;;  %4414 = vmatprep.mubr.msk.bf16.mxu0 %vm4896_vm0, %v4895_v1 }
 0x33a   : > { %2239 = vst.msk [vmem:[%s5335_s5 + $0x18] sm:$0xff] %vm1569_vm2, %v1816_v55  ;;  %v1820_v56 = vpack.c.bf16 %v1816_v55, %v1816_v55  ;;  %4424 = vmatprep.subr.bf16.mxu0 %v4895_v1  ;;  %v4704_v55 = vld [vmem:[%s5928_s12 + $0x10] sm:$0xff]  }
 0x33c   : > { %4409 = vmatmul.mubr.msk.bf16.vlgmr.msra.gmra.mrb[36].mxu1 %vm1569_vm2, %v1820_v56  ;;  %v4705_v56 = vld [vmem:[%s5928_s12 + $0x8] sm:$0xff]  }
 0x33d   : > { %4420 = vmatprep.mubr.msk.bf16.mxu1 %vm4896_vm0, %v4895_v1  ;;  %4419 = vmatpush3.bf16.msra.mxu1 %v2064_v58 }
 0x33e   : > { %4430 = vmatprep.subr.bf16.mxu1 %v4895_v1 }
 0x403   : > { %v1862_v60 = vpop.f32.mrb[32].mxu0 }
 0x404   : > { %v2006_v61 = vpack.c.bf16 %v1862_v60, %v1862_v60  ;;  %v4392_v62 = vpop.f32.mrb[33].mxu0 }
 0x405   : > { %v1865_v0 = vpop.f32.mrb[34].mxu0  ;;  %v4064_v62 = vld [vmem:[%s5929_s6] ss:$0 sm:$0xff]  ;;  %s856_s6 = scalar_lea.vmem %s5931_s10, %s5113_s4  ;;  %s4771_s10 = scalar_lea.vmem %s5725_s30, 512 }
 0x406   : > { %v4393_v3 = vpop.f32.mrb[35].mxu0  ;;  %4415 = vmatmul.mubr.msk.bf16.vlgmr.msra.gmra.mrb[40].mxu0 %vm1569_vm2, %v2006_v61  ;;  %v4065_v0 = vld [vmem:[%s5930_s11] ss:$0 sm:$0xff]  ;;  %p4772_p11 = scmp.ne.s32.totalorder %s5725_s30, %s4771_s10 }
 0x407   : > { %v1908_v4 = vpop.f32.mrb[32].mxu1  ;;  %4425 = vmatpush3.bf16.msra.mxu0 %v2110_v63  ;;  %4426 = vmatprep.mubr.msk.bf16.mxu0 %vm4896_vm0, %v4895_v1 }
 0x408   : > { %v2007_v5 = vpack.c.bf16 %v1908_v4, %v1908_v4  ;;  %v4398_v6 = vpop.f32.mrb[33].mxu1  ;;  %4436 = vmatprep.subr.bf16.mxu0 %v4895_v1  ;;  %p4773_p12 = pnand %p4772_p11, %p5078_p5 }
 0x409   : > { %v1911_v9 = vpop.f32.mrb[34].mxu1  ;;  %v4707_v6 = vld [vmem:[%s5928_s12 + $0x20] sm:$0xff]  }
 0x40a   : > { %v4399_v10 = vpop.f32.mrb[35].mxu1  ;;  %4421 = vmatmul.mubr.msk.bf16.vlgmr.msra.gmra.mrb[40].mxu1 %vm1569_vm2, %v2007_v5  ;;  %p4774_p13 = pneg %p4773_p12 }
 0x40b   : > { %v1954_v11 = vpop.f32.mrb[36].mxu0  ;;  %4431 = vmatpush3.bf16.msra.mxu1 %v2156_v8  ;;  %4432 = vmatprep.mubr.msk.bf16.mxu1 %vm4896_vm0, %v4895_v1  ;;  %v4708_v8 = vld [vmem:[%s5928_s12 + $0x30] sm:$0xff]   ;;  %v4709_v10 = vld [vmem:[%s5928_s12 + $0x28] sm:$0xff]  }
 0x40c   : > { %v2008_v12 = vpack.c.bf16 %v1954_v11, %v1954_v11  ;;  %v4404_v13 = vpop.f32.mrb[37].mxu0  ;;  %4444 = vmatprep.subr.bf16.mxu1 %v4895_v1  ;;  %v4710_v11 = vld [vmem:[%s5928_s12 + $0x38] sm:$0xff]  }
 0x40d   : > { %v1957_v14 = vpop.f32.mrb[38].mxu0  ;;  %v4712_v13 = vld [vmem:[%s5861_s13 + $0x10] sm:$0xff]  }
 0x40e   : > { %v4405_v15 = vpop.f32.mrb[39].mxu0  ;;  %4427 = vmatmul.mubr.msk.bf16.vlgmr.msra.gmra.mrb[44].mxu0 %vm1569_vm2, %v2008_v12  ;;  %v4711_v12 = vld [vmem:[%s5861_s13] sm:$0xff]   ;;  %v4713_v14 = vld [vmem:[%s5861_s13 + $0x8] sm:$0xff]  }
 0x40f   : > { %v2000_v16 = vpop.f32.mrb[36].mxu1  ;;  %4440 = vmatprep.mubr.msk.bf16.mxu0 %vm4896_vm0, %v4895_v1  ;;  %v4714_v15 = vld [vmem:[%s5861_s13 + $0x18] sm:$0xff]  }
 0x410   : > { %v2009_v17 = vpack.c.bf16 %v2000_v16, %v2000_v16  ;;  %v4410_v18 = vpop.f32.mrb[37].mxu1  ;;  %v870_v16 = vld [vmem:[%s856_s6] sm:$0xff]  ;;  %s4898_s6 = smov [#allocation4]  }
 0x411   : > { %v2003_v19 = vpop.f32.mrb[38].mxu1  ;;  %v4715_v18 = vld [vmem:[%s5861_s13 + $0x20] sm:$0xff]   ;;  %s4775_s7 = sshll.u32 %s4898_s6, 4  ;;  %s4776_s7 = int_to_ptr.vmem [resolvable:$false] %s4775_s7 }
 0x412   : > { %v4411_v20 = vpop.f32.mrb[39].mxu1  ;;  %4433 = vmatmul.mubr.msk.bf16.vlgmr.msra.gmra.mrb[44].mxu1 %vm1569_vm2, %v2009_v17  ;;  %v2248_v17 = vpack.c.bf16 %v870_v16, %v870_v16  ;;  %v4716_v19 = vld [vmem:[%s5861_s13 + $0x30] sm:$0xff]   ;;  %s4777_s11 = scalar_lea.vmem %s4776_s7, 1024  ;;  %p4778_p0 = scmp.lt.s32.totalorder %s5725_s30, %s4776_s7 }
 0x413   : > { %4448 = vmatprep.mubr.msk.bf16.mxu1 %vm4896_vm0, %v4895_v1  ;;  %4445 = vmatpush3.bf16.msra.mxu1 %v4704_v55  ;;  %v4717_v20 = vld [vmem:[%s5861_s13 + $0x28] sm:$0xff]   ;;  %p4779_p1 = scmp.lt.s32.totalorder %s4777_s11, %s4771_s10 }
 0x414   : > { %4446 = vmatprep.subr.bf16.mxu1 %v4895_v1 }
 0x415   : > { %p4780_p2 = por %p4779_p1, %p4778_p0 }
 0x417   : > { %4447 = vmatpush3.bf16.msra.mxu1 %v4706_v57  ;;  %p4781_p3 = pnand %p4780_p2, %p4774_p13 }
 0x418   : > { %4460 = vmatprep.subr.bf16.mxu1 %v4895_v1 }
 0x4d9   : > { %v2054_v21 = vpop.f32.mrb[40].mxu0 }
 0x4da   : > { %v4416_v22 = vpop.f32.mrb[41].mxu0  ;;  %v2198_v28 = vsel %vm901_vm1, %v2054_v21, 0.0  ;;  %v4718_v21 = vld [vmem:[%s5861_s13 + $0x38] sm:$0xff]  }
 0x4db   : > { %v2057_v23 = vpop.f32.mrb[42].mxu0  ;;  %v4719_v22 = vld [vmem:[%s5862_s14] sm:$0xff]  }
 0x4dc   : > { %v4417_v24 = vpop.f32.mrb[43].mxu0  ;;  %v4720_v23 = vld [vmem:[%s5862_s14 + $0x10] sm:$0xff]  }
 0x4dd   : > { %v2100_v27 = vpop.f32.mrb[40].mxu1  ;;  %v4721_v24 = vld [vmem:[%s5862_s14 + $0x8] sm:$0xff]  }
 0x4de   : > { %v2199_v29 = vsel %vm901_vm1, %v2100_v27, 0.0  ;;  %v4422_v30 = vpop.f32.mrb[41].mxu1  ;;  %v4722_v27 = vld [vmem:[%s5862_s14 + $0x18] sm:$0xff]  }
 0x4df   : > { %v2200_v31 = vadd.f32 %v2199_v29, %v2198_v28  ;;  %v2103_v32 = vpop.f32.mrb[42].mxu1  ;;  %v4723_v28 = vld [vmem:[%s5862_s14 + $0x20] sm:$0xff]   ;;  %v4724_v29 = vld [vmem:[%s5862_s14 + $0x30] sm:$0xff]   ;;  %v4725_v30 = vld [vmem:[%s5862_s14 + $0x28] sm:$0xff]  }
 0x4e0   : > { %v4423_v34 = vpop.f32.mrb[43].mxu1 }
 0x4e1   : > { %v2146_v35 = vpop.f32.mrb[44].mxu0 }
 0x4e2   : > { %v2201_v38 = vsel %vm901_vm1, %v2146_v35, 0.0  ;;  %v4428_v39 = vpop.f32.mrb[45].mxu0 }
 0x4e3   : > { %v2202_v40 = vadd.f32 %v2201_v38, %v2200_v31  ;;  %v2149_v41 = vpop.f32.mrb[46].mxu0  ;;  %v4726_v31 = vld [vmem:[%s5862_s14 + $0x38] sm:$0xff]  }
 0x4e4   : > { %v4429_v42 = vpop.f32.mrb[47].mxu0 }
 0x4e5   : > { %v2192_v43 = vpop.f32.mrb[44].mxu1 }
 0x4e6   : > { %v2203_v44 = vsel %vm901_vm1, %v2192_v43, 0.0  ;;  %v4434_v45 = vpop.f32.mrb[45].mxu1 }
 0x4e7   : > { %v2204_v46 = vadd.f32 %v2203_v44, %v2202_v40  ;;  %v2195_v47 = vpop.f32.mrb[46].mxu1 }
 0x4e8   : > { %v4435_v48 = vpop.f32.mrb[47].mxu1 }
 0x4e9   : > { %v2205_v25 = vadd.f32 %v2204_v46, %v5126_v7  ;;  %v4703_v7 = vld [vmem:[%s5928_s12] sm:$0xff]  }
 0x4ea   : > { %4437 = vmatpush3.bf16.msra.mxu0 %v4703_v7 }
 0x4eb   : > { %v2208_v49 = vsel %vm901_vm1, %v2205_v25, 0.0  ;;  %4438 = vmatprep.subr.bf16.mxu0 %v4895_v1 }
 0x4ec   : > { %2209 = vadd.xlane.f32.xlu0 %v2208_v49 }
 0x4ee   : > { %4439 = vmatpush3.bf16.msra.mxu0 %v4705_v56 }
 0x4ef   : > { %4452 = vmatprep.subr.bf16.mxu0 %v4895_v1 }
 0x502   : > { %2242 = vperm.xlu0 %4678, %v868_v50  }
 0x579   : > { %v2210_v26 = vpop.xlane.xlu0 %2209 }
 0x57a   : > { %v2212_v51 = vmul.f32 0.03125, %v2210_v26 }
 0x57c   : > { %v2213_v52 = vsub.f32 %v2205_v25, %v2212_v51 }
 0x57e   : > { %v2214_v53 = vmul.f32 %v2213_v52, %v2213_v52 }
 0x580   : > { %v2215_v54 = vsel %vm901_vm1, %v2214_v53, 0.0 }
 0x581   : > { %2216 = vadd.xlane.f32.xlu1 %v2215_v54  ;;  %v5428_v3 = vpop.permute.xlu0 %2242 }
 0x60e   : > { %v2217_v58 = vpop.xlane.xlu1 %2216 }
 0x60f   : > { %v2218_v59 = vmul.f32 0.03125, %v2217_v58 }
 0x611   : > { %v2219_v60 = vadd.f32 1e-06, %v2218_v59 }
 0x613   : > { %4749 = vrsqrt.f32 %v2219_v60 }
 0x61d   : > { %v4750_v61 = vpop.eup %4749 }
 0x61e   : > { %v2221_v63 = vmul.f32 %v4750_v61, %v2213_v52 }
 0x620   : > { %v2228_v2 = vmul.f32 %v4064_v62, %v2221_v63 }
 0x622   : > { %v2235_v4 = vadd.f32 %v4065_v0, %v2228_v2 }
 0x624   : > { %v5431_v5 = vmul.f32 %v5428_v3, %v2235_v4 }
 0x626   : > { %v2247_v9 = vpack.c.bf16 %v5431_v5, %v5431_v5 }
 0x628   : > { %4441 = vmatmul.mubr.msk.bf16.vlgmr.msra.gmra.mrb[48].mxu0 %vm901_vm1, %v2247_v9  ;;  %4449 = vmatmul.mubr.msk.bf16.vlgmr.msra.gmra.mrb[48].mxu1 %vm901_vm1, %v2247_v9 }
 0x629   : > { %4453 = vmatpush3.bf16.msra.mxu0 %v4707_v6  ;;  %4461 = vmatpush3.bf16.msra.mxu1 %v4708_v8 }
 0x62a   : > { %4454 = vmatprep.subr.bf16.mxu0 %v4895_v1  ;;  %4462 = vmatprep.subr.bf16.mxu1 %v4895_v1 }
 0x62b   : > { %4456 = vmatprep.mubr.msk.bf16.mxu0 %vm4896_vm0, %v4895_v1  ;;  %4464 = vmatprep.mubr.msk.bf16.mxu1 %vm4896_vm0, %v4895_v1 }
 0x62d   : > { %4455 = vmatpush3.bf16.msra.mxu0 %v4709_v10  ;;  %4463 = vmatpush3.bf16.msra.mxu1 %v4710_v11 }
 0x62e   : > { %4468 = vmatprep.subr.bf16.mxu0 %v4895_v1  ;;  %4476 = vmatprep.subr.bf16.mxu1 %v4895_v1 }
 0x630   : > { %4457 = vmatmul.mubr.msk.bf16.vlgmr.msra.gmra.mrb[52].mxu0 %vm901_vm1, %v2247_v9  ;;  %4465 = vmatmul.mubr.msk.bf16.vlgmr.msra.gmra.mrb[52].mxu1 %vm901_vm1, %v2247_v9 }
 0x631   : > { %4469 = vmatpush3.bf16.msra.mxu0 %v4711_v12  ;;  %4477 = vmatpush3.bf16.msra.mxu1 %v4712_v13 }
 0x632   : > { %4470 = vmatprep.subr.bf16.mxu0 %v4895_v1  ;;  %4478 = vmatprep.subr.bf16.mxu1 %v4895_v1 }
 0x633   : > { %4472 = vmatprep.mubr.msk.bf16.mxu0 %vm4896_vm0, %v4895_v1  ;;  %4480 = vmatprep.mubr.msk.bf16.mxu1 %vm4896_vm0, %v4895_v1 }
 0x635   : > { %4471 = vmatpush3.bf16.msra.mxu0 %v4713_v14  ;;  %4479 = vmatpush3.bf16.msra.mxu1 %v4714_v15 }
 0x636   : > { %4484 = vmatprep.subr.bf16.mxu0 %v4895_v1  ;;  %4492 = vmatprep.subr.bf16.mxu1 %v4895_v1 }
 0x638   : > { %4473 = vmatmul.mubr.msk.bf16.vlgmr.msra.gmra.mrb[56].mxu0 %vm901_vm1, %v2248_v17  ;;  %4481 = vmatmul.mubr.msk.bf16.vlgmr.msra.gmra.mrb[56].mxu1 %vm901_vm1, %v2248_v17 }
 0x639   : > { %4485 = vmatpush3.bf16.msra.mxu0 %v4715_v18  ;;  %4493 = vmatpush3.bf16.msra.mxu1 %v4716_v19 }
 0x63a   : > { %4486 = vmatprep.subr.bf16.mxu0 %v4895_v1  ;;  %4494 = vmatprep.subr.bf16.mxu1 %v4895_v1 }
 0x63b   : > { %4488 = vmatprep.mubr.msk.bf16.mxu0 %vm4896_vm0, %v4895_v1  ;;  %4496 = vmatprep.mubr.msk.bf16.mxu1 %vm4896_vm0, %v4895_v1 }
 0x63d   : > { %4487 = vmatpush3.bf16.msra.mxu0 %v4717_v20  ;;  %4495 = vmatpush3.bf16.msra.mxu1 %v4718_v21 }
 0x63e   : > { %4500 = vmatprep.subr.bf16.mxu0 %v4895_v1  ;;  %4508 = vmatprep.subr.bf16.mxu1 %v4895_v1 }
 0x640   : > { %4489 = vmatmul.mubr.msk.bf16.vlgmr.msra.gmra.mrb[60].mxu0 %vm901_vm1, %v2248_v17  ;;  %4497 = vmatmul.mubr.msk.bf16.vlgmr.msra.gmra.mrb[60].mxu1 %vm901_vm1, %v2248_v17 }
 0x641   : > { %4501 = vmatpush3.bf16.msra.mxu0 %v4719_v22  ;;  %4509 = vmatpush3.bf16.msra.mxu1 %v4720_v23 }
 0x642   : > { %4502 = vmatprep.subr.bf16.mxu0 %v4895_v1  ;;  %4510 = vmatprep.subr.bf16.mxu1 %v4895_v1 }
 0x643   : > { %4504 = vmatprep.mubr.msk.bf16.mxu0 %vm4896_vm0, %v4895_v1  ;;  %4512 = vmatprep.mubr.msk.bf16.mxu1 %vm4896_vm0, %v4895_v1 }
 0x645   : > { %4503 = vmatpush3.bf16.msra.mxu0 %v4721_v24  ;;  %4511 = vmatpush3.bf16.msra.mxu1 %v4722_v27 }
 0x646   : > { %4516 = vmatprep.subr.bf16.mxu0 %v4895_v1  ;;  %4524 = vmatprep.subr.bf16.mxu1 %v4895_v1 }
 0x648   : > { %4505 = vmatmul.mubr.msk.bf16.vlgmr.msra.gmra.mrb[64].mxu0 %vm901_vm1, %v2248_v17  ;;  %4513 = vmatmul.mubr.msk.bf16.vlgmr.msra.gmra.mrb[64].mxu1 %vm901_vm1, %v2248_v17 }
 0x649   : > { %4517 = vmatpush3.bf16.msra.mxu0 %v4723_v28  ;;  %4520 = vmatprep.mubr.msk.bf16.mxu0 %vm4896_vm0, %v4895_v1 }
 0x64a   : > { %4518 = vmatprep.subr.bf16.mxu0 %v4895_v1  ;;  %4525 = vmatpush3.bf16.msra.mxu1 %v4724_v29 }
 0x64b   : > { %4528 = vmatprep.mubr.msk.bf16.mxu1 %vm4896_vm0, %v4895_v1  ;;  %4526 = vmatprep.subr.bf16.mxu1 %v4895_v1 }
 0x64d   : > { %4519 = vmatpush3.bf16.msra.mxu0 %v4725_v30 }
 0x64e   : > { %4527 = vmatpush3.bf16.msra.mxu1 %v4726_v31  ;;  %4532 = vmatprep.subr.bf16.mxu0 %v4895_v1 }
 0x64f   : > { %4538 = vmatprep.subr.bf16.mxu1 %v4895_v1 }
 0x650   : > { %4521 = vmatmul.mubr.msk.bf16.vlgmr.msra.gmra.mrb[68].mxu0 %vm901_vm1, %v2248_v17 }
 0x651   : > { %4529 = vmatmul.mubr.msk.bf16.vlgmr.msra.gmra.mrb[68].mxu1 %vm901_vm1, %v2248_v17  ;;  %4534 = vmatprep.mubr.msk.bf16.mxu0 %vm4896_vm0, %v4895_v1 }
 0x652   : > { %4540 = vmatprep.mubr.msk.bf16.mxu1 %vm4896_vm0, %v4895_v1 }
 0x6fb   : > { %v2314_v32 = vpop.f32.mrb[48].mxu0  ;;  %v2366_v34 = vpop.f32.mrb[48].mxu1 }
 0x6fc   : > { %v4442_v35 = vpop.f32.mrb[49].mxu0  ;;  %v4450_v38 = vpop.f32.mrb[49].mxu1  ;;  %v2927_v60 = vmul.f32 0.35355338, %v2314_v32  ;;  %v2928_v61 = vmul.f32 0.35355338, %v2366_v34 }
 0x6fd   : > { %v2317_v39 = vpop.f32.mrb[50].mxu0  ;;  %v2369_v40 = vpop.f32.mrb[50].mxu1 }
 0x6fe   : > { %v4443_v41 = vpop.f32.mrb[51].mxu0  ;;  %v4451_v42 = vpop.f32.mrb[51].mxu1  ;;  %v2931_v0 = vpack.c.bf16 %v2927_v60, %v2927_v60  ;;  %v2932_v2 = vpack.c.bf16 %v2928_v61, %v2928_v61 }
 0x703   : > { %v2418_v43 = vpop.f32.mrb[52].mxu0  ;;  %v2470_v44 = vpop.f32.mrb[52].mxu1 }
 0x704   : > { %v4458_v45 = vpop.f32.mrb[53].mxu0  ;;  %v4466_v46 = vpop.f32.mrb[53].mxu1  ;;  %v2929_v16 = vmul.f32 0.35355338, %v2418_v43  ;;  %v2930_v17 = vmul.f32 0.35355338, %v2470_v44 }
 0x705   : > { %v2421_v47 = vpop.f32.mrb[54].mxu0  ;;  %v2473_v48 = vpop.f32.mrb[54].mxu1  ;;  %v2246_v45 = vld [vmem:[%s866_s28] sm:$0x1]  ;;  %s3793_s28 = sand.u32 1, %s5059_s8  }
 0x706   : > { %v4459_v25 = vpop.f32.mrb[55].mxu0  ;;  %v4467_v49 = vpop.f32.mrb[55].mxu1  ;;  %v2933_v18 = vpack.c.bf16 %v2929_v16, %v2929_v16  ;;  %v2934_v19 = vpack.c.bf16 %v2930_v17, %v2930_v17  ;;  %vm3127_vm8 = vcmp.ne.f32.partialorder %v2246_v45, 0.0  ;;  %s5727_s3 = scalar_lea.sflag [#allocation5], %s3793_s28 }
 0x707   : > { %v3128_v46 = vsel %vm3127_vm8, 1, %v4897_v33 }
 0x708   : > { %v3132_v47 = vrot.slane %v3128_v46, %v1758_v37  ;;  %v3374_v46 = vld [vmem:[%s5863_s15] sm:$0xf] }
 0x70a   : > { %vm3133_vm9 = vcmp.eq.s32.totalorder %v3132_v47, 1 }
 0x70b   : > { %v2541_v50 = vpop.f32.mrb[56].mxu0  ;;  %v2593_v26 = vpop.f32.mrb[56].mxu1 }
 0x70c   : > { %v2935_v51 = vpack.c.bf16 %v2541_v50, %v2541_v50  ;;  %v2936_v52 = vpack.c.bf16 %v2593_v26, %v2593_v26  ;;  %v4474_v53 = vpop.f32.mrb[57].mxu0  ;;  %v4482_v54 = vpop.f32.mrb[57].mxu1 }
 0x70d   : > { %v2544_v7 = vpop.f32.mrb[58].mxu0  ;;  %v2596_v55 = vpop.f32.mrb[58].mxu1 }
 0x70e   : > { %v2947_v56 = vsel %vm1569_vm2, %v2935_v51, 0  ;;  %v2993_v57 = vsel %vm1569_vm2, %v2936_v52, 0  ;;  %v4475_v58 = vpop.f32.mrb[59].mxu0  ;;  %v4483_v59 = vpop.f32.mrb[59].mxu1 }
 0x70f   : > { %4533 = vmatpush3.bf16.xpose.msra.mxu0 %v2947_v56  ;;  %4539 = vmatpush3.bf16.xpose.msra.mxu1 %v2993_v57 }
 0x710   : > { %4544 = vmatprep.subr.bf16.mxu0 %v4895_v1  ;;  %4550 = vmatprep.subr.bf16.mxu1 %v4895_v1 }
 0x713   : > { %v2645_v62 = vpop.f32.mrb[60].mxu0  ;;  %v2697_v63 = vpop.f32.mrb[60].mxu1 }
 0x714   : > { %v2937_v4 = vpack.c.bf16 %v2645_v62, %v2645_v62  ;;  %v2938_v6 = vpack.c.bf16 %v2697_v63, %v2697_v63  ;;  %v4490_v8 = vpop.f32.mrb[61].mxu0  ;;  %v4498_v9 = vpop.f32.mrb[61].mxu1 }
 0x715   : > { %v2648_v10 = vpop.f32.mrb[62].mxu0  ;;  %v2700_v11 = vpop.f32.mrb[62].mxu1 }
 0x716   : > { %v3039_v12 = vsel %vm1569_vm2, %v2937_v4, 0  ;;  %v3085_v13 = vsel %vm1569_vm2, %v2938_v6, 0  ;;  %v4491_v14 = vpop.f32.mrb[63].mxu0  ;;  %4535 = vmatmul.mubr.msk.bf16.vlgmr.msra.gmra.mrb[72].mxu0 %vm1569_vm2, %v2931_v0  ;;  %4541 = vmatmul.mubr.msk.bf16.vlgmr.msra.gmra.mrb[72].mxu1 %vm1569_vm2, %v2932_v2  ;;  %v4499_v15 = vpop.f32.mrb[63].mxu1 }
 0x717   : > { %4545 = vmatpush3.bf16.xpose.msra.mxu0 %v3039_v12  ;;  %4551 = vmatpush3.bf16.xpose.msra.mxu1 %v3085_v13 }
 0x718   : > { %4546 = vmatprep.mubr.msk.bf16.mxu0 %vm4896_vm0, %v4895_v1  ;;  %4552 = vmatprep.mubr.msk.bf16.mxu1 %vm4896_vm0, %v4895_v1 }
 0x719   : > { %4556 = vmatprep.subr.bf16.mxu0 %v4895_v1  ;;  %4562 = vmatprep.subr.bf16.mxu1 %v4895_v1 }
 0x71b   : > { %v2765_v20 = vpop.f32.mrb[64].mxu0  ;;  %v2817_v24 = vpop.f32.mrb[64].mxu1 }
 0x71c   : > { %v2939_v21 = vpack.c.bf16 %v2765_v20, %v2765_v20  ;;  %v4506_v22 = vpop.f32.mrb[65].mxu0  ;;  %v2940_v29 = vpack.c.bf16 %v2817_v24, %v2817_v24  ;;  %v4514_v30 = vpop.f32.mrb[65].mxu1 }
 0x71d   : > { %v2768_v23 = vpop.f32.mrb[66].mxu0  ;;  %v2820_v31 = vpop.f32.mrb[66].mxu1 }
 0x71e   : > { %4547 = vmatmul.mubr.msk.bf16.vlgmr.msra.gmra.mrb[76].mxu0 %vm1569_vm2, %v2933_v18  ;;  %4553 = vmatmul.mubr.msk.bf16.vlgmr.msra.gmra.mrb[76].mxu1 %vm1569_vm2, %v2934_v19  ;;  %v3190_v27 = vsel %vm1824_vm3, %v2939_v21, 0  ;;  %v4507_v28 = vpop.f32.mrb[67].mxu0  ;;  %v3236_v32 = vsel %vm1824_vm3, %v2940_v29, 0  ;;  %v4515_v34 = vpop.f32.mrb[67].mxu1 }
 0x71f   : > { %4558 = vmatprep.mubr.msk.bf16.mxu0 %vm4896_vm0, %v4895_v1  ;;  %4564 = vmatprep.mubr.msk.bf16.mxu1 %vm4896_vm0, %v4895_v1 }
 0x720   : > { %4557 = vmatpush3.bf16.msra.mxu0 %v3190_v27  ;;  %4563 = vmatpush3.bf16.msra.mxu1 %v3236_v32 }
 0x721   : > { %4568 = vmatprep.subr.bf16.mxu0 %v4895_v1  ;;  %4574 = vmatprep.subr.bf16.mxu1 %v4895_v1 }
 0x723   : > { %v5579_v35 = vpop.f32.mrb[68].mxu0 }
 0x724   : > { %v5581_v38 = vpop.f32.mrb[68].mxu1  ;;  %v4522_v39 = vpop.f32.mrb[69].mxu0  ;;  %v2941_v32 = vpack.c.bf16 %v5579_v35, %v5579_v35 }
 0x725   : > { %v4530_v40 = vpop.f32.mrb[69].mxu1  ;;  %v2872_v41 = vpop.f32.mrb[70].mxu0 }
 0x726   : > { %v2924_v42 = vpop.f32.mrb[70].mxu1  ;;  %v4523_v43 = vpop.f32.mrb[71].mxu0 }
 0x727   : > { %v4531_v44 = vpop.f32.mrb[71].mxu1  ;;  %v3282_v42 = vsel %vm1824_vm3, %v2941_v32, 0  ;;  %v2942_v43 = vpack.c.bf16 %v5581_v38, %v5581_v38 }
 0x729   : > { %v3328_v38 = vsel %vm1824_vm3, %v2942_v43, 0 }
 0x7e9   : > { %v2983_v48 = vpop.f32.mrb[72].mxu0  ;;  %v3029_v25 = vpop.f32.mrb[72].mxu1 }
 0x7ea   : > { %v3134_v49 = vsel %vm3133_vm9, %v2983_v48, -1e+09  ;;  %v4536_v50 = vpop.f32.mrb[73].mxu0  ;;  %v4542_v26 = vpop.f32.mrb[73].mxu1  ;;  %v3135_v54 = vsel %vm3133_vm9, %v3029_v25, -1e+09 }
 0x7eb   : > { %v2986_v51 = vpop.f32.mrb[74].mxu0  ;;  %v3032_v52 = vpop.f32.mrb[74].mxu1  ;;  %v3138_v53 = vsel %vm1569_vm2, %v3134_v49, -inf  ;;  %v3141_v33 = vsel %vm1569_vm2, %v3135_v54, -inf  ;;  %v3382_v25 = vsel %vm1824_vm3, %v3374_v46, 0 }
 0x7ec   : > { %v4543_v7 = vpop.f32.mrb[75].mxu1  ;;  %3139 = vmax.xlane.f32.xlu1 %v3138_v53  ;;  %v4537_v55 = vpop.f32.mrb[75].mxu0  ;;  %v3375_v51 = vld [vmem:[%s5863_s15 + $0x4] sm:$0xf]  ;;  %v3376_v53 = vld [vmem:[%s5863_s15 + $0x8] sm:$0xf] }
 0x7ed   : > { %v3428_v52 = vsel %vm1824_vm3, %v3375_v51, 0 }
 0x7f0   : > { %3142 = vmax.xlane.f32.xlu1 %v3141_v33  ;;  %v3474_v33 = vsel %vm1824_vm3, %v3376_v53, 0  ;;  %v4114_v53 = vld [vmem:[%s5864_s16] ss:$0 sm:$0xff] }
 0x7f1   : > { %v3075_v36 = vpop.f32.mrb[76].mxu0  ;;  %v3121_v37 = vpop.f32.mrb[76].mxu1 }
 0x7f2   : > { %v3136_v56 = vsel %vm3133_vm9, %v3075_v36, -1e+09  ;;  %v4548_v57 = vpop.f32.mrb[77].mxu0  ;;  %v4554_v58 = vpop.f32.mrb[77].mxu1  ;;  %v3137_v62 = vsel %vm3133_vm9, %v3121_v37, -1e+09 }
 0x7f3   : > { %v3078_v59 = vpop.f32.mrb[78].mxu0  ;;  %v3124_v60 = vpop.f32.mrb[78].mxu1  ;;  %v3144_v61 = vsel %vm1569_vm2, %v3136_v56, -inf  ;;  %v3147_v2 = vsel %vm1569_vm2, %v3137_v62, -inf  ;;  %v3377_v37 = vld [vmem:[%s5863_s15 + $0xc] sm:$0xf] }
 0x7f4   : > { %v4555_v63 = vpop.f32.mrb[79].mxu1  ;;  %3145 = vmax.xlane.f32.xlu1 %v3144_v61  ;;  %v4549_v0 = vpop.f32.mrb[79].mxu0  ;;  %v3520_v60 = vsel %vm1824_vm3, %v3377_v37, 0 }
 0x7f8   : > { %3148 = vmax.xlane.f32.xlu1 %v3147_v2 }
 0x879   : > { %v3140_v4 = vpop.xlane.xlu1 %3139 }
 0x87a   : > { %v3150_v6 = vsub.f32 %v3134_v49, %v3140_v4 }
 0x87c   : > { %v3154_v8 = vmul.f32 1.442695, %v3150_v6 }
 0x87d   : > { %v3143_v9 = vpop.xlane.xlu1 %3142 }
 0x87e   : > { %4751 = vpow2.f32 %v3154_v8  ;;  %v3151_v10 = vsub.f32 %v3135_v54, %v3143_v9 }
 0x880   : > { %v3156_v11 = vmul.f32 1.442695, %v3151_v10 }
 0x881   : > { %v3146_v12 = vpop.xlane.xlu1 %3145 }
 0x882   : > { %4753 = vpow2.f32 %v3156_v11  ;;  %v3152_v13 = vsub.f32 %v3136_v56, %v3146_v12 }
 0x884   : > { %v3158_v14 = vmul.f32 1.442695, %v3152_v13 }
 0x885   : > { %v3149_v15 = vpop.xlane.xlu1 %3148 }
 0x886   : > { %4755 = vpow2.f32 %v3158_v14  ;;  %v3153_v16 = vsub.f32 %v3137_v62, %v3149_v15 }
 0x888   : > { %v4752_v17 = vpop.eup %4751  ;;  %v3160_v18 = vmul.f32 1.442695, %v3153_v16 }
 0x889   : > { %v3162_v19 = vsel %vm1569_vm2, %v4752_v17, 0.0 }
 0x88a   : > { %4757 = vpow2.f32 %v3160_v18  ;;  %3163 = vadd.xlane.f32.xlu1 %v3162_v19 }
 0x88c   : > { %v4754_v20 = vpop.eup %4753 }
 0x88d   : > { %v3165_v21 = vsel %vm1569_vm2, %v4754_v20, 0.0 }
 0x88e   : > { %3166 = vadd.xlane.f32.xlu1 %v3165_v21 }
 0x890   : > { %v4756_v22 = vpop.eup %4755 }
 0x891   : > { %v3168_v23 = vsel %vm1569_vm2, %v4756_v22, 0.0 }
 0x892   : > { %3169 = vadd.xlane.f32.xlu1 %v3168_v23 }
 0x894   : > { %v4758_v24 = vpop.eup %4757 }
 0x895   : > { %v3171_v27 = vsel %vm1569_vm2, %v4758_v24, 0.0 }
 0x896   : > { %3172 = vadd.xlane.f32.xlu1 %v3171_v27 }
 0x917   : > { %v3164_v28 = vpop.xlane.xlu1 %3163 }
 0x918   : > { %4759 = vrcp.f32 %v3164_v28 }
 0x91b   : > { %v3167_v29 = vpop.xlane.xlu1 %3166 }
 0x91c   : > { %4761 = vrcp.f32 %v3167_v29 }
 0x91f   : > { %v3170_v30 = vpop.xlane.xlu1 %3169 }
 0x920   : > { %4763 = vrcp.f32 %v3170_v30 }
 0x922   : > { %v4760_v31 = vpop.eup %4759 }
 0x923   : > { %v3178_v34 = vmul.f32 %v4760_v31, %v4752_v17  ;;  %v3173_v39 = vpop.xlane.xlu1 %3172 }
 0x924   : > { %4765 = vrcp.f32 %v3173_v39 }
 0x925   : > { %3599 = vst.msk [vmem:[%s5606_s9] sm:$0xff] %vm1569_vm2, %v3178_v34  ;;  %v3182_v40 = vpack.c.bf16 %v3178_v34, %v3178_v34 }
 0x926   : > { %v4762_v41 = vpop.eup %4761 }
 0x927   : > { %v3179_v44 = vmul.f32 %v4762_v41, %v4754_v20  ;;  %4559 = vmatmul.mubr.msk.bf16.vlgmr.msra.gmra.mrb[80].mxu0 %vm1569_vm2, %v3182_v40 }
 0x928   : > { %4569 = vmatpush3.bf16.msra.mxu0 %v3282_v42  ;;  %4570 = vmatprep.mubr.msk.bf16.mxu0 %vm4896_vm0, %v4895_v1 }
 0x929   : > { %3600 = vst.msk [vmem:[%s5606_s9 + $0x8] sm:$0xff] %vm1569_vm2, %v3179_v44  ;;  %v3183_v35 = vpack.c.bf16 %v3179_v44, %v3179_v44  ;;  %4580 = vmatprep.subr.bf16.mxu0 %v4895_v1 }
 0x92a   : > { %v4764_v45 = vpop.eup %4763 }
 0x92b   : > { %v3180_v47 = vmul.f32 %v4764_v45, %v4756_v22  ;;  %4565 = vmatmul.mubr.msk.bf16.vlgmr.msra.gmra.mrb[80].mxu1 %vm1569_vm2, %v3183_v35 }
 0x92c   : > { %4575 = vmatpush3.bf16.msra.mxu1 %v3328_v38  ;;  %4576 = vmatprep.mubr.msk.bf16.mxu1 %vm4896_vm0, %v4895_v1 }
 0x92d   : > { %3601 = vst.msk [vmem:[%s5606_s9 + $0x10] sm:$0xff] %vm1569_vm2, %v3180_v47  ;;  %v3184_v48 = vpack.c.bf16 %v3180_v47, %v3180_v47  ;;  %4586 = vmatprep.subr.bf16.mxu1 %v4895_v1 }
 0x92e   : > { %v4766_v49 = vpop.eup %4765 }
 0x92f   : > { %v3181_v50 = vmul.f32 %v4766_v49, %v4758_v24  ;;  %4571 = vmatmul.mubr.msk.bf16.vlgmr.msra.gmra.mrb[84].mxu0 %vm1569_vm2, %v3184_v48  ;;  %v4727_v48 = vld [vmem:[%s5866_s18] sm:$0xff]   ;;  %v4730_v49 = vld [vmem:[%s5868_s20 + $0x8] sm:$0xff]  }
 0x930   : > { %4581 = vmatpush3.bf16.msra.mxu0 %v3382_v25  ;;  %4582 = vmatprep.mubr.msk.bf16.mxu0 %vm4896_vm0, %v4895_v1  ;;  %v4728_v25 = vld [vmem:[%s5866_s18 + $0x8] sm:$0xff]  }
 0x931   : > { %3602 = vst.msk [vmem:[%s5606_s9 + $0x18] sm:$0xff] %vm1569_vm2, %v3181_v50  ;;  %v3185_v26 = vpack.c.bf16 %v3181_v50, %v3181_v50  ;;  %4592 = vmatprep.subr.bf16.mxu0 %v4895_v1 }
 0x933   : > { %4577 = vmatmul.mubr.msk.bf16.vlgmr.msra.gmra.mrb[84].mxu1 %vm1569_vm2, %v3185_v26 }
 0x934   : > { %4588 = vmatprep.mubr.msk.bf16.mxu1 %vm4896_vm0, %v4895_v1  ;;  %4587 = vmatpush3.bf16.msra.mxu1 %v3428_v52 }
 0x935   : > { %4598 = vmatprep.subr.bf16.mxu1 %v4895_v1 }
 0x9fa   : > { %v3226_v54 = vpop.f32.mrb[80].mxu0 }
 0x9fb   : > { %v3370_v7 = vpack.c.bf16 %v3226_v54, %v3226_v54  ;;  %v4560_v55 = vpop.f32.mrb[81].mxu0 }
 0x9fc   : > { %v3229_v36 = vpop.f32.mrb[82].mxu0 }
 0x9fd   : > { %v4561_v56 = vpop.f32.mrb[83].mxu0  ;;  %4583 = vmatmul.mubr.msk.bf16.vlgmr.msra.gmra.mrb[88].mxu0 %vm1569_vm2, %v3370_v7  ;;  %v4115_v7 = vld [vmem:[%s5865_s17] ss:$0 sm:$0xff] }
 0x9fe   : > { %v3272_v57 = vpop.f32.mrb[80].mxu1  ;;  %4593 = vmatpush3.bf16.msra.mxu0 %v3474_v33  ;;  %4594 = vmatprep.mubr.msk.bf16.mxu0 %vm4896_vm0, %v4895_v1  ;;  %v4731_v56 = vld [vmem:[%s5868_s20 + $0x10] sm:$0xff]  }
 0x9ff   : > { %v3371_v58 = vpack.c.bf16 %v3272_v57, %v3272_v57  ;;  %v4566_v59 = vpop.f32.mrb[81].mxu1  ;;  %4604 = vmatprep.subr.bf16.mxu0 %v4895_v1  ;;  %v4732_v57 = vld [vmem:[%s5868_s20 + $0x18] sm:$0xff]  }
 0xa00   : > { %v3275_v61 = vpop.f32.mrb[82].mxu1 }
 0xa01   : > { %v4567_v62 = vpop.f32.mrb[83].mxu1  ;;  %4589 = vmatmul.mubr.msk.bf16.vlgmr.msra.gmra.mrb[88].mxu1 %vm1569_vm2, %v3371_v58  ;;  %v4116_v58 = vld [vmem:[%s5867_s19] ss:$0 sm:$0xff] }
 0xa02   : > { %v3318_v63 = vpop.f32.mrb[84].mxu0  ;;  %4599 = vmatpush3.bf16.msra.mxu1 %v3520_v60  ;;  %4600 = vmatprep.mubr.msk.bf16.mxu1 %vm4896_vm0, %v4895_v1 }
 0xa03   : > { %v3372_v0 = vpack.c.bf16 %v3318_v63, %v3318_v63  ;;  %v4572_v2 = vpop.f32.mrb[85].mxu0  ;;  %4612 = vmatprep.subr.bf16.mxu1 %v4895_v1 }
 0xa04   : > { %v3321_v4 = vpop.f32.mrb[86].mxu0 }
 0xa05   : > { %v4573_v6 = vpop.f32.mrb[87].mxu0  ;;  %4595 = vmatmul.mubr.msk.bf16.vlgmr.msra.gmra.mrb[92].mxu0 %vm1569_vm2, %v3372_v0 }
 0xa06   : > { %v3364_v8 = vpop.f32.mrb[84].mxu1  ;;  %4608 = vmatprep.mubr.msk.bf16.mxu0 %vm4896_vm0, %v4895_v1  ;;  %4605 = vmatpush3.bf16.msra.mxu0 %v4727_v48 }
 0xa07   : > { %v3373_v9 = vpack.c.bf16 %v3364_v8, %v3364_v8  ;;  %v4578_v10 = vpop.f32.mrb[85].mxu1  ;;  %4606 = vmatprep.subr.bf16.mxu0 %v4895_v1 }
 0xa08   : > { %v3367_v11 = vpop.f32.mrb[86].mxu1 }
 0xa09   : > { %v4579_v12 = vpop.f32.mrb[87].mxu1  ;;  %4601 = vmatmul.mubr.msk.bf16.vlgmr.msra.gmra.mrb[92].mxu1 %vm1569_vm2, %v3373_v9 }
 0xa0a   : > { %4620 = vmatprep.mubr.msk.bf16.mxu1 %vm4896_vm0, %v4895_v1  ;;  %4607 = vmatpush3.bf16.msra.mxu0 %v4728_v25 }
 0xad0   : > { %v3418_v13 = vpop.f32.mrb[88].mxu0 }
 0xad1   : > { %v4584_v14 = vpop.f32.mrb[89].mxu0  ;;  %v3562_v18 = vsel %vm901_vm1, %v3418_v13, 0.0 }
 0xad2   : > { %v3421_v15 = vpop.f32.mrb[90].mxu0 }
 0xad3   : > { %v4585_v16 = vpop.f32.mrb[91].mxu0 }
 0xad4   : > { %v3464_v17 = vpop.f32.mrb[88].mxu1 }
 0xad5   : > { %v3563_v19 = vsel %vm901_vm1, %v3464_v17, 0.0  ;;  %v4590_v20 = vpop.f32.mrb[89].mxu1 }
 0xad6   : > { %v3564_v21 = vadd.f32 %v3563_v19, %v3562_v18  ;;  %v3467_v22 = vpop.f32.mrb[90].mxu1 }
 0xad7   : > { %v4591_v23 = vpop.f32.mrb[91].mxu1 }
 0xad8   : > { %v3510_v24 = vpop.f32.mrb[92].mxu0 }
 0xad9   : > { %v3565_v27 = vsel %vm901_vm1, %v3510_v24, 0.0  ;;  %v4596_v28 = vpop.f32.mrb[93].mxu0 }
 0xada   : > { %v3566_v29 = vadd.f32 %v3565_v27, %v3564_v21  ;;  %v3513_v30 = vpop.f32.mrb[94].mxu0 }
 0xadb   : > { %v4597_v31 = vpop.f32.mrb[95].mxu0 }
 0xadc   : > { %v3556_v32 = vpop.f32.mrb[92].mxu1 }
 0xadd   : > { %v3567_v34 = vsel %vm901_vm1, %v3556_v32, 0.0  ;;  %v4602_v39 = vpop.f32.mrb[93].mxu1 }
 0xade   : > { %v3568_v40 = vadd.f32 %v3567_v34, %v3566_v29  ;;  %v3559_v41 = vpop.f32.mrb[94].mxu1 }
 0xadf   : > { %v4603_v42 = vpop.f32.mrb[95].mxu1 }
 0xae0   : > { %v3569_v43 = vadd.f32 %v3568_v40, %v5431_v5  ;;  %v4729_v5 = vld [vmem:[%s5868_s20] sm:$0xff]  }
 0xae1   : > { %4613 = vmatpush3.bf16.msra.mxu1 %v4729_v5 }
 0xae2   : > { %v3572_v44 = vsel %vm901_vm1, %v3569_v43, 0.0  ;;  %4614 = vmatprep.subr.bf16.mxu1 %v4895_v1 }
 0xae3   : > { %3573 = vadd.xlane.f32.xlu1 %v3572_v44 }
 0xae5   : > { %4615 = vmatpush3.bf16.msra.mxu1 %v4730_v49 }
 0xae6   : > { %4616 = vmatprep.subr.bf16.mxu1 %v4895_v1 }
 0xae9   : > { %4617 = vmatpush3.bf16.msra.mxu1 %v4731_v56 }
 0xaea   : > { %4618 = vmatprep.subr.bf16.mxu1 %v4895_v1  ;;  %v4120_v1 = vld [vmem:[%s5869_s21] ss:$0 sm:$0xff] }
 0xaed   : > { %4619 = vmatpush3.bf16.msra.mxu1 %v4732_v57 }
 0xb70   : > { %v3574_v35 = vpop.xlane.xlu1 %3573 }
 0xb71   : > { %v3575_v45 = vmul.f32 0.03125, %v3574_v35 }
 0xb73   : > { %v3576_v46 = vsub.f32 %v3569_v43, %v3575_v45 }
 0xb75   : > { %v3577_v38 = vmul.f32 %v3576_v46, %v3576_v46 }
 0xb77   : > { %v3578_v47 = vsel %vm901_vm1, %v3577_v38, 0.0 }
 0xb78   : > { %3579 = vadd.xlane.f32.xlu1 %v3578_v47 }
 0xc05   : > { %v3580_v50 = vpop.xlane.xlu1 %3579 }
 0xc06   : > { %v3581_v26 = vmul.f32 0.03125, %v3580_v50 }
 0xc08   : > { %v3582_v51 = vadd.f32 1e-06, %v3581_v26 }
 0xc0a   : > { %4767 = vrsqrt.f32 %v3582_v51 }
 0xc14   : > { %v4768_v52 = vpop.eup %4767 }
 0xc15   : > { %v3584_v54 = vmul.f32 %v4768_v52, %v3576_v46 }
 0xc17   : > { %v3591_v55 = vmul.f32 %v4114_v53, %v3584_v54 }
 0xc19   : > { %v3598_v33 = vadd.f32 %v4115_v7, %v3591_v55 }
 0xc1b   : > { %v3603_v36 = vmul.f32 %v3598_v33, %v5428_v3 }
 0xc1d   : > { %v3604_v37 = vpack.c.bf16 %v3603_v36, %v3603_v36 }
 0xc1f   : > { %4609 = vmatmul.mubr.msk.bf16.vlgmr.msra.gmra.mrb[96].mxu0 %vm901_vm1, %v3604_v37 }
 0xcf2   : > { %v3665_v59 = vpop.f32.mrb[96].mxu0 }
 0xcf3   : > { %v3666_v60 = vadd.f32 %v4116_v58, %v3665_v59  ;;  %v4610_v61 = vpop.f32.mrb[97].mxu0 }
 0xcf4   : > { %v3668_v62 = vpop.f32.mrb[98].mxu0 }
 0xcf5   : > { %v3671_v63 = vmax.f32 %v3666_v60, 0.0  ;;  %v4611_v0 = vpop.f32.mrb[99].mxu0 }
 0xcf7   : > { %v3672_v2 = vpack.c.bf16 %v3671_v63, %v3671_v63 }
 0xcf9   : > { %4621 = vmatmul.mubr.msk.bf16.vlgmr.msra.gmra.mrb[96].mxu1 %vm3712_vm10, %v3672_v2 }
 0xdcc   : > { %v3750_v4 = vpop.f32.mrb[96].mxu1 }
 0xdcd   : > { %v3751_v6 = vadd.f32 %v4120_v1, %v3750_v4  ;;  %v4622_v8 = vpop.f32.mrb[97].mxu1 }
 0xdce   : > { %v3753_v9 = vpop.f32.mrb[98].mxu1 }
 0xdcf   : > { %v4623_v10 = vpop.f32.mrb[99].mxu1  ;;  %v3756_v11 = vadd.f32 %v3751_v6, %v3603_v36 }
 0xdd1   : > { %v3759_v12 = vsel %vm901_vm1, %v3756_v11, 0.0 }
 0xdd2   : > { %3760 = vadd.xlane.f32.xlu1 %v3759_v12 }
 0xe5f   : > { %v3761_v13 = vpop.xlane.xlu1 %3760 }
 0xe60   : > { %v3762_v14 = vmul.f32 0.03125, %v3761_v13 }
 0xe62   : > { %v5710_v15 = vsub.f32 %v3756_v11, %v3762_v14 }
 0xe64   : > { %v3764_v16 = vmul.f32 %v5710_v15, %v5710_v15 }
 0xe66   : > { %v3765_v17 = vsel %vm901_vm1, %v3764_v16, 0.0 }
 0xe67   : > { %3766 = vadd.xlane.f32.xlu0 %v3765_v17 }
 0xe68   : > { %4784 = shalt.err (!%p4781_p3)
}
 0xe69   : > { %s4785_s5 = scalar_lea.hbm %s5722_s1, 512  ;;  %s4789_s4 = scalar_lea.hbm %s5873_s25, 1024 }
 0xe6a   : > { %p4786_p4 = scmp.ne.s32.totalorder %s5722_s1, %s4785_s5  ;;  %p4790_p9 = scmp.lt.u32.totalorder %s5722_s1, %s5873_s25 }
 0xe6b   : > { %p4791_p10 = scmp.lt.u32.totalorder %s4789_s4, %s4785_s5  ;;  %p4793_p12 = scmp.lt.u32.totalorder %s4785_s5, %s5722_s1 }
 0xe6c   : > { %p4787_p7 = pnand %p4786_p4, %p5078_p5 }
 0xe6d   : > { %p4792_p11 = por %p4791_p10, %p4790_p9 }
 0xe6e   : > { %p4788_p8 = pneg %p4787_p7 }
 0xe6f   : > { %p4794_p13 = por %p4793_p12, %p4792_p11 }
 0xe71   : > { %p4795_p0 = pnand %p4794_p13, %p4788_p8 }
 0xe73   : > { %4798 = shalt.err (!%p4795_p0)
}
 0xe74   : > { %s4899_s11 = smov 128   ;;  %s4900_s10 = smov 8  }
 0xe75   : > { %4625 = dma.vmem_to_hbm [thread:$0]  (%p5078_p5), %s5725_s30, 512, %s5722_s1, %s5727_s3, %s4899_s11, %s4899_s11, %s4900_s10  }
 0xe76   : > { %s5759_s29 = scalar_lea.hbm %s5874_s26, %s4138_s0  ;;  %s3841_s4 = sshll.u32 %s5606_s9, 4  ;;  %s5762_s4 = int_to_ptr.vmem [resolvable:$true] %s3841_s4 }
 0xe77   : > { %s4799_s6 = scalar_lea.vmem %s5762_s4, 512  ;;  %s4901_s7 = smov [#allocation6]  }
 0xe78   : > { %p4800_p1 = scmp.ne.s32.totalorder %s5762_s4, %s4799_s6  ;;  %s4803_s12 = sshll.u32 %s4901_s7, 4  ;;  %s4804_s12 = int_to_ptr.vmem [resolvable:$false] %s4803_s12 }
 0xe79   : > { %s4805_s1 = scalar_lea.vmem %s4804_s12, 1024  ;;  %p4806_p4 = scmp.lt.s32.totalorder %s5762_s4, %s4804_s12 }
 0xe7a   : > { %p4801_p2 = pnand %p4800_p1, %p5078_p5  ;;  %p4807_p7 = scmp.lt.s32.totalorder %s4805_s1, %s4799_s6 }
 0xe7c   : > { %p4802_p3 = pneg %p4801_p2  ;;  %p4808_p8 = por %p4807_p7, %p4806_p4 }
 0xe7e   : > { %p4809_p9 = pnand %p4808_p8, %p4802_p3 }
 0xe80   : > { %4812 = shalt.err (!%p4809_p9)
}
 0xe81   : > { %s4813_s9 = scalar_lea.hbm %s5759_s29, 512  ;;  %s4817_s28 = scalar_lea.hbm %s5874_s26, 1024 }
 0xe82   : > { %p4814_p10 = scmp.ne.s32.totalorder %s5759_s29, %s4813_s9  ;;  %p4818_p13 = scmp.lt.u32.totalorder %s5759_s29, %s5874_s26 }
 0xe83   : > { %p4819_p0 = scmp.lt.u32.totalorder %s4817_s28, %s4813_s9  ;;  %p4821_p2 = scmp.lt.u32.totalorder %s4813_s9, %s5759_s29 }
 0xe84   : > { %p4815_p11 = pnand %p4814_p10, %p5078_p5 }
 0xe85   : > { %p4820_p1 = por %p4819_p0, %p4818_p13 }
 0xe86   : > { %p4816_p12 = pneg %p4815_p11 }
 0xe87   : > { %p4822_p3 = por %p4821_p2, %p4820_p1 }
 0xe89   : > { %p4823_p4 = pnand %p4822_p3, %p4816_p12 }
 0xe8b   : > { %4826 = shalt.err (!%p4823_p4)
}
 0xe8c   : > { %4626 = dma.vmem_to_hbm [thread:$0]  (%p5078_p5), %s5762_s4, 512, %s5759_s29, %s5727_s3, %s4899_s11, %s4899_s11, %s4900_s10  }
 0xe8d   : > { %s4010_s6 = sshll.u32 %s5328_s27, 3  ;;  %v4126_v22 = vld [vmem:[%s5870_s22] ss:$0 sm:$0xff]  ;;  %s4131_s3 = sshll.u32 %s5059_s8, 7 }
 0xe8e   : > { %v4127_v24 = vld [vmem:[%s5871_s23] ss:$0 sm:$0xff]  ;;  %s834_s11 = scalar_lea.vmem [#allocation2], %s4010_s6  ;;  %s5802_s30 = scalar_lea.hbm %s5872_s24, %s4131_s3 }
 0xe8f   : > { %s3812_s10 = sshll.u32 %s834_s11, 4  ;;  %s3789_s28 = scalar_lea.sflag [#allocation3], %s5328_s27  ;;  %s5804_s10 = int_to_ptr.vmem [resolvable:$true] %s3812_s10 }
 0xe90   : > { %s4827_s5 = scalar_lea.vmem %s5804_s10, 128  ;;  %s4902_s8 = smov [#allocation2]  }
 0xe91   : > { %p4828_p7 = scmp.ne.s32.totalorder %s5804_s10, %s4827_s5  ;;  %s4831_s12 = sshll.u32 %s4902_s8, 4  ;;  %s4832_s12 = int_to_ptr.vmem [resolvable:$false] %s4831_s12 }
 0xe92   : > { %s4833_s6 = scalar_lea.vmem %s4832_s12, 256  ;;  %p4834_p10 = scmp.lt.s32.totalorder %s5804_s10, %s4832_s12 }
 0xe93   : > { %p4829_p8 = pnand %p4828_p7, %p5078_p5  ;;  %p4835_p11 = scmp.lt.s32.totalorder %s4833_s6, %s4827_s5 }
 0xe95   : > { %p4830_p9 = pneg %p4829_p8  ;;  %p4836_p12 = por %p4835_p11, %p4834_p10 }
 0xe97   : > { %p4837_p13 = pnand %p4836_p12, %p4830_p9 }
 0xef4   : > { %v3767_v18 = vpop.xlane.xlu0 %3766 }
 0xef5   : > { %v3768_v19 = vmul.f32 0.03125, %v3767_v18 }
 0xef7   : > { %v3769_v20 = vadd.f32 1e-06, %v3768_v19 }
 0xef9   : > { %4769 = vrsqrt.f32 %v3769_v20 }
 0xf03   : > { %v4770_v21 = vpop.eup %4769 }
 0xf04   : > { %v3771_v23 = vmul.f32 %v4770_v21, %v5710_v15 }
 0xf06   : > { %v3778_v27 = vmul.f32 %v4126_v22, %v3771_v23 }
 0xf08   : > { %v3785_v28 = vadd.f32 %v4127_v24, %v3778_v27 }
 0xf0a   : > { %v3786_v29 = vmul.f32 %v3785_v28, %v5428_v3 }
 0xf0c   : > { %3787 = vst.msk [vmem:[%s834_s11] sm:$0xff] %vm901_vm1, %v3786_v29 }
 0xf0d   : > { %4840 = shalt.err (!%p4837_p13)
}
 0xf0e   : > { %s4841_s27 = scalar_lea.hbm %s5802_s30, 128  ;;  %s4845_s9 = scalar_lea.hbm %s5872_s24, 256 }
 0xf0f   : > { %p4842_p0 = scmp.ne.s32.totalorder %s5802_s30, %s4841_s27  ;;  %p4846_p3 = scmp.lt.u32.totalorder %s5802_s30, %s5872_s24 }
 0xf10   : > { %p4847_p4 = scmp.lt.u32.totalorder %s4845_s9, %s4841_s27  ;;  %p4849_p8 = scmp.lt.u32.totalorder %s4841_s27, %s5802_s30 }
 0xf11   : > { %p4843_p1 = pnand %p4842_p0, %p5078_p5 }
 0xf12   : > { %p4848_p7 = por %p4847_p4, %p4846_p3 }
 0xf13   : > { %p4844_p2 = pneg %p4843_p1 }
 0xf14   : > { %p4850_p9 = por %p4849_p8, %p4848_p7 }
 0xf16   : > { %p4851_p10 = pnand %p4850_p9, %p4844_p2 }
 0xf18   : > { %4854 = shalt.err (!%p4851_p10)
}
 0xf19   : > { %4624 = dma.vmem_to_hbm [thread:$0]  (%p5078_p5), %s5804_s10, 128, %s5802_s30, %s3789_s28  }
 0xf1a PF: > { %s5934_s11 = sld [smem:[#allocation12_spill]]  ;;  %s5935_s29 = sld [smem:[#allocation9_spill]] }
 0xf20   : > { %p4640_p11 = scmp.ge.s32.totalorder %s5934_s11, 2  ;;  %s3856_s5 = sand.u32 1, %s5935_s29  }
 0xf21   : > { %s3857_s8 = scalar_lea.sflag [#allocation3], %s3856_s5 }
 0xf22   : > { %p4631_p12 = pnand %p4640_p11, %p5082_p6 }
 0xf24   : > { %4872 = dma.done.wait (!%p4631_p12), %s3857_s8, 128  }
 0xf25   : > { %4874 = vsyncadd (!%p4631_p12), %s3857_s8, 4294967168  ;;  %s5937_s12 = sadd.s32 4294967294, %s5934_s11  }
 0xf26   : > { %s3865_s6 = sand.u32 1, %s5937_s12  }
 0xf27   : > { %s3866_s27 = scalar_lea.sflag [#allocation5], %s3865_s6 }
 0xf28   : > { %4876 = dma.done.wait (!%p4631_p12), %s3866_s27, 1024  }
 0xf29   : > { %4878 = vsyncadd (!%p4631_p12), %s3866_s27, 4294966272  ;;  %s5938_s28 = sld [smem:[#allocation13_spill]]  ;;  %s5939_s27 = sld [smem:[#allocation10_spill]] }
 0xf2a   : > { %s5940_s3 = sld [smem:[#allocation11_spill]]  ;;  %s5941_s7 = sld [smem:[#allocation14_spill]] }
 0xf2f   : > { %p40_p5 = scmp.ge.s32.totalorder %s5938_s28, 4  }
 0xf31   :  { %42 = sbr.rel (!%p40_p5) target bundleno = 19 (0x13), region = 195 }
 0xf38   :  { %3880 = vsyncpa [#allocation3], 1 }
 0xf39   :  { %3882 = vsyncpa [#allocation3 + $0x1], 1 }
 0xf3a   :  { %3883 = vsyncpa [#allocation5], 1 }
 0xf3b   :  { %3885 = vsyncpa [#allocation5 + $0x1], 1 }

</bundles_post_ra>
